<compile_context>
chip_gen: v5e
topology: v5e:2x2
jax: 0.10.0
libtpu: 0.0.40
codegen_flags: <defaults>
</compile_context>

<pallas_src>
import functools

import jax
import jax.numpy as jnp
from jax.experimental import pallas as pl
from jax.experimental.pallas import tpu as pltpu

# ---- model dimensions (small synthetic encoder standing in for roberta-base) ----
B = 2           # batch per tower
S = 8           # sequence length
H = 32          # hidden size (stands in for 768)
FFN = 64        # feed-forward inner dim
N_LAYERS = 2    # encoder layers
VOCAB = 64      # vocabulary size (padding_idx = 0)
EPS_LN = 1e-5

H_PAD = ((H + 127) // 128) * 128   # lane-dense output width (multiple of 128)
BATCH_BLOCK = 2                    # rows per "parallel" grid step
# Explicit scoped-VMEM budget.  Irrelevant at toy shapes; at roberta scale size
# this from 2x double-buffered per-layer weights + activation/KV-tile working
# set, staying <= 64 MiB physical on v7x.
VMEM_LIMIT_BYTES = 32 * 1024 * 1024


def _layer_norm(x, gamma, beta):
    mu = jnp.mean(x, axis=-1, keepdims=True)
    var = jnp.mean((x - mu) ** 2, axis=-1, keepdims=True)
    return (x - mu) * jax.lax.rsqrt(var + EPS_LN) * gamma + beta


# --------------------------------------------------------------------------
# Pallas kernel: one grid step = (batch block, encoder layer).
# --------------------------------------------------------------------------
def _encoder_kernel(x_ref, mask_ref, wqkv_ref, wo_ref, w1_ref, w2_ref,
                    bias_ref, ln_ref, o_ref, act_ref, *, normalize):
    layer = pl.program_id(1)
    n_layers = pl.num_programs(1)

    @pl.when(layer == 0)
    def _():
        act_ref[...] = x_ref[0]          # residual stream <- embeddings

    x = act_ref[...]                     # (bn, S, H) f32
    mask = mask_ref[0]                   # (bn, S)    f32
    bn, s, h = x.shape
    neg = (1.0 - mask)[:, None, :] * (-1e9)        # key-padding mask (bn, 1, S)
    scale = float(h) ** -0.5

    # per-layer weights (bf16 MXU operands) and packed f32 params
    wq = wqkv_ref[0, 0]                  # (H, H)   bf16
    wk = wqkv_ref[0, 1]
    wv = wqkv_ref[0, 2]
    wo = wo_ref[0]                       # (H, H)   bf16
    w1 = w1_ref[0]                       # (H, FFN) bf16
    w2 = w2_ref[0]                       # (FFN, H) bf16
    bias = bias_ref[0]                   # (6, FFN) f32: q | k | v | o | ffn1 | ffn2
    b_q, b_k, b_v = bias[0:1, :h], bias[1:2, :h], bias[2:3, :h]
    b_o, b_f1, b_f2 = bias[3:4, :h], bias[4:5, :], bias[5:6, :h]
    ln = ln_ref[0]                       # (4, H)   f32
    g1, be1, g2, be2 = ln[0:1], ln[1:2], ln[2:3], ln[3:4]

    # --- self-attention: lane-aligned per-projection matmuls, bf16 in / f32 acc
    x2d = x.reshape(bn * s, h)
    x_bf = x2d.astype(jnp.bfloat16)
    q = (jnp.dot(x_bf, wq, preferred_element_type=jnp.float32) + b_q).reshape(bn, s, h)
    k = (jnp.dot(x_bf, wk, preferred_element_type=jnp.float32) + b_k).reshape(bn, s, h)
    v = (jnp.dot(x_bf, wv, preferred_element_type=jnp.float32) + b_v).reshape(bn, s, h)

    scores = jnp.einsum('bqd,bkd->bqk',
                        q.astype(jnp.bfloat16), k.astype(jnp.bfloat16),
                        preferred_element_type=jnp.float32) * scale + neg
    m = jnp.max(scores, axis=-1, keepdims=True)
    p = jnp.exp(scores - m)
    p = p * pl.reciprocal(jnp.sum(p, axis=-1, keepdims=True), approx=True)
    ctx = jnp.einsum('bqk,bkd->bqd',
                     p.astype(jnp.bfloat16), v.astype(jnp.bfloat16),
                     preferred_element_type=jnp.float32)               # (bn, S, H)

    attn = jnp.dot(ctx.reshape(bn * s, h).astype(jnp.bfloat16), wo,
                   preferred_element_type=jnp.float32) + b_o
    hid = _layer_norm(x2d + attn, g1, be1)                             # (bn*S, H)

    # --- feed-forward ---
    f = jnp.dot(hid.astype(jnp.bfloat16), w1,
                preferred_element_type=jnp.float32) + b_f1
    f = jax.nn.gelu(f, approximate=True)
    f = jnp.dot(f.astype(jnp.bfloat16), w2,
                preferred_element_type=jnp.float32) + b_f2
    out = _layer_norm(hid + f, g2, be2).reshape(bn, s, h)
    act_ref[...] = out

    # --- last layer: mask mean pooling + optional L2 normalize + lane-dense store
    @pl.when(layer == n_layers - 1)
    def _():
        w = mask[:, :, None]
        summed = jnp.sum(out * w, axis=1)                               # (bn, H)
        denom = jnp.maximum(jnp.sum(mask, axis=1, keepdims=True), 1e-9)
        rep = summed * pl.reciprocal(denom, approx=True)
        if normalize:
            nrm = jnp.sqrt(jnp.sum(rep * rep, axis=-1, keepdims=True))
            rep = rep / jnp.maximum(nrm, 1e-12)   # exact div: F.normalize semantics
        if H_PAD > h:                              # pad to a full 128-lane store
            rep = jnp.concatenate(
                [rep, jnp.zeros((bn, H_PAD - h), jnp.float32)], axis=-1)
        o_ref[...] = rep[None].astype(o_ref.dtype)


# --------------------------------------------------------------------------
# Wrapper: embeddings (plain JAX) + single pallas_call over (batch, layer) grid
# --------------------------------------------------------------------------
def encode(params, input_ids, attention_mask, normalize_repr):
    n_total, s = input_ids.shape
    x = jnp.take(params['tok_emb'], input_ids, axis=0)                 # (N, S, H)
    x = x + params['pos_emb'][None, :s, :]
    mask_f = attention_mask.astype(jnp.float32)                        # (N, S)

    bn = BATCH_BLOCK if n_total % BATCH_BLOCK == 0 else n_total
    nb = n_total // bn
    x = x.reshape(nb, bn, s, H)
    mask_f = mask_f.reshape(nb, bn, s)

    lmap3 = lambda b, l: (l, 0, 0)

    out = pl.pallas_call(
        functools.partial(_encoder_kernel, normalize=normalize_repr),
        out_shape=jax.ShapeDtypeStruct((nb, bn, H_PAD), jnp.float32),
        grid_spec=pltpu.PrefetchScalarGridSpec(
            num_scalar_prefetch=0,
            grid=(nb, N_LAYERS),
            in_specs=[
                pl.BlockSpec((1, bn, s, H), lambda b, l: (b, 0, 0, 0)),   # x
                pl.BlockSpec((1, bn, s), lambda b, l: (b, 0, 0)),          # mask
                pl.BlockSpec((1, 3, H, H), lambda b, l: (l, 0, 0, 0)),     # wqkv
                pl.BlockSpec((1, H, H), lmap3),                            # wo
                pl.BlockSpec((1, H, FFN), lmap3),                          # w1
                pl.BlockSpec((1, FFN, H), lmap3),                          # w2
                pl.BlockSpec((1, 6, FFN), lmap3),                          # bias
                pl.BlockSpec((1, 4, H), lmap3),                            # ln
            ],
            out_specs=pl.BlockSpec((1, bn, H_PAD), lambda b, l: (b, 0, 0)),
            scratch_shapes=[pltpu.VMEM((bn, s, H), jnp.float32)],
        ),
        compiler_params=pltpu.CompilerParams(
            dimension_semantics=("parallel", "arbitrary"),
            vmem_limit_bytes=VMEM_LIMIT_BYTES),
    )(x, mask_f, params['wqkv'], params['wo'], params['w1'], params['w2'],
      params['bias'], params['ln'])
    return out.reshape(n_total, H_PAD)[:, :H]


# --------------------------------------------------------------------------
# Pure-JAX reference (f32 matmuls, exact divisions) for correctness check
# --------------------------------------------------------------------------
def encode_reference(params, input_ids, attention_mask, normalize_repr):
    x = jnp.take(params['tok_emb'], input_ids, axis=0)
    x = x + params['pos_emb'][None, :input_ids.shape[1], :]
    mask = attention_mask.astype(jnp.float32)
    neg = (1.0 - mask)[:, None, :] * (-1e9)
    n, s, h = x.shape
    for li in range(N_LAYERS):
        wq = params['wqkv'][li, 0].astype(jnp.float32)
        wk = params['wqkv'][li, 1].astype(jnp.float32)
        wv = params['wqkv'][li, 2].astype(jnp.float32)
        wo = params['wo'][li].astype(jnp.float32)
        w1 = params['w1'][li].astype(jnp.float32)
        w2 = params['w2'][li].astype(jnp.float32)
        bias = params['bias'][li]
        b_q, b_k, b_v = bias[0, :h], bias[1, :h], bias[2, :h]
        b_o, b_f1, b_f2 = bias[3, :h], bias[4, :], bias[5, :h]
        ln = params['ln'][li]
        g1, be1, g2, be2 = ln[0], ln[1], ln[2], ln[3]

        x2d = x.reshape(n * s, h)
        q = (x2d @ wq + b_q).reshape(n, s, h)
        k = (x2d @ wk + b_k).reshape(n, s, h)
        v = (x2d @ wv + b_v).reshape(n, s, h)
        scores = jnp.einsum('bqd,bkd->bqk', q, k) * (float(h) ** -0.5) + neg
        p = jax.nn.softmax(scores, axis=-1)
        ctx = jnp.einsum('bqk,bkd->bqd', p, v)
        attn = ctx.reshape(n * s, h) @ wo + b_o
        hid = _layer_norm(x2d + attn, g1, be1)
        f = jax.nn.gelu(hid @ w1 + b_f1, approximate=True)
        f = f @ w2 + b_f2
        x = _layer_norm(hid + f, g2, be2).reshape(n, s, h)
    w = mask[:, :, None]
    rep = jnp.sum(x * w, axis=1) / jnp.maximum(jnp.sum(mask, axis=1, keepdims=True), 1e-9)
    if normalize_repr:
        rep = rep / jnp.maximum(
            jnp.linalg.norm(rep, axis=-1, keepdims=True), 1e-12)
    return rep


# --------------------------------------------------------------------------
# Parameters (deterministic init) and siamese forward
# --------------------------------------------------------------------------
def _dense(key, fan_in, fan_out):
    return (jax.random.normal(key, (fan_in, fan_out), jnp.float32)
            / jnp.sqrt(jnp.float32(fan_in)))


def init_params(key):
    keys = jax.random.split(key, 2 + N_LAYERS)
    tok_emb = 0.02 * jax.random.normal(keys[0], (VOCAB, H), jnp.float32)
    tok_emb = tok_emb.at[0].set(0.0)       # padding_idx = 0
    pos_emb = 0.02 * jax.random.normal(keys[1], (S, H), jnp.float32)

    def seg(k_, width):                    # one bias segment per sublane row
        v = 0.02 * jax.random.normal(k_, (width,), jnp.float32)
        return jnp.pad(v, (0, FFN - width))

    wqkv, wo, w1, w2, bias, ln = [], [], [], [], [], []
    for li in range(N_LAYERS):
        lk = jax.random.split(keys[2 + li], 12)
        wqkv.append(jnp.stack([_dense(lk[0], H, H), _dense(lk[1], H, H),
                               _dense(lk[2], H, H)], axis=0))          # (3, H, H)
        wo.append(_dense(lk[3], H, H))
        w1.append(_dense(lk[4], H, FFN))
        w2.append(_dense(lk[5], FFN, H))
        bias.append(jnp.stack([seg(lk[6], H), seg(lk[7], H), seg(lk[8], H),
                               seg(lk[9], H), seg(lk[10], FFN), seg(lk[11], H)],
                              axis=0))                                  # (6, FFN)
        ln.append(jnp.stack([jnp.ones((H,), jnp.float32),               # g1
                             jnp.zeros((H,), jnp.float32),              # be1
                             jnp.ones((H,), jnp.float32),               # g2
                             jnp.zeros((H,), jnp.float32)], axis=0))    # (4, H)
    return {
        'tok_emb': tok_emb,
        'pos_emb': pos_emb,
        # bf16 MXU operands with f32 accumulation in-kernel
        'wqkv': jnp.stack(wqkv).astype(jnp.bfloat16),   # (L, 3, H, H)
        'wo': jnp.stack(wo).astype(jnp.bfloat16),       # (L, H, H)
        'w1': jnp.stack(w1).astype(jnp.bfloat16),       # (L, H, FFN)
        'w2': jnp.stack(w2).astype(jnp.bfloat16),       # (L, FFN, H)
        'bias': jnp.stack(bias),                        # (L, 6, FFN) f32
        'ln': jnp.stack(ln),                            # (L, 4, H)   f32
    }


def siamese_forward(params, doc_input_ids, doc_attention_mask,
                    lbl_input_ids, lbl_attention_mask, normalize_repr=True):
    """Matches SiameseNetwork.forward (shared joint encoder)."""
    if doc_input_ids is None:
        return encode(params, lbl_input_ids, lbl_attention_mask, normalize_repr)
    if lbl_input_ids is None:
        return encode(params, doc_input_ids, doc_attention_mask, normalize_repr)
    # shared weights -> encode both towers in one fused call, then split
    ids = jnp.concatenate([doc_input_ids, lbl_input_ids], axis=0)
    mask = jnp.concatenate([doc_attention_mask, lbl_attention_mask], axis=0)
    emb = encode(params, ids, mask, normalize_repr)
    nb = doc_input_ids.shape[0]
    return emb[:nb], emb[nb:]


# --------------------------------------------------------------------------
if __name__ == "__main__":
    key = jax.random.PRNGKey(0)
    pkey, dkey, lkey = jax.random.split(key, 3)
    params = init_params(pkey)

    # document / label tower inputs (padding_idx = 0 where mask == 0)
    doc_mask = jnp.concatenate(
        [jnp.ones((B, 6), jnp.int32), jnp.zeros((B, 2), jnp.int32)], axis=1)
    lbl_mask = jnp.concatenate(
        [jnp.ones((B, 5), jnp.int32), jnp.zeros((B, 3), jnp.int32)], axis=1)
    doc_ids = jax.random.randint(dkey, (B, S), 1, VOCAB, dtype=jnp.int32) * doc_mask
    lbl_ids = jax.random.randint(lkey, (B, S), 1, VOCAB, dtype=jnp.int32) * lbl_mask

    doc_emb, lbl_emb = siamese_forward(
        params, doc_ids, doc_mask, lbl_ids, lbl_mask, normalize_repr=True)
    jax.block_until_ready((doc_emb, lbl_emb))

    assert doc_emb.shape == (B, H) and lbl_emb.shape == (B, H)
    assert doc_emb.dtype == jnp.float32 and lbl_emb.dtype == jnp.float32
    # normalized reps should have unit L2 norm (exact division in-kernel)
    assert bool(jnp.all(jnp.abs(jnp.linalg.norm(doc_emb, axis=-1) - 1.0) < 1e-4))
    assert bool(jnp.all(jnp.abs(jnp.linalg.norm(lbl_emb, axis=-1) - 1.0) < 1e-4))

    # pure-JAX reference check (bf16 matmuls + approx reciprocals -> loose tol)
    doc_ref = encode_reference(params, doc_ids, doc_mask, True)
    lbl_ref = encode_reference(params, lbl_ids, lbl_mask, True)
    assert bool(jnp.max(jnp.abs(doc_emb - doc_ref)) < 5e-2)
    assert bool(jnp.max(jnp.abs(lbl_emb - lbl_ref)) < 5e-2)

    # single-tower branch of SiameseNetwork.forward (label-only)
    only_lbl = siamese_forward(params, None, None, lbl_ids, lbl_mask,
                               normalize_repr=True)
    jax.block_until_ready(only_lbl)
    assert only_lbl.shape == (B, H)
    assert bool(jnp.max(jnp.abs(only_lbl - lbl_ref)) < 5e-2)

    print("KERNEL_OK")
</pallas_src>

<mosaic_0001>
module attributes {stable_mosaic.version = 11 : i64} {
  func.func @_encoder_kernel(%arg0: i32, %arg1: i32, %arg2: memref<1x2x8x32xf32, #tpu.memory_space<vmem>>, %arg3: memref<1x2x8xf32, #tpu.memory_space<vmem>>, %arg4: memref<1x3x32x32xbf16, #tpu.memory_space<vmem>>, %arg5: memref<1x32x32xbf16, #tpu.memory_space<vmem>>, %arg6: memref<1x32x64xbf16, #tpu.memory_space<vmem>>, %arg7: memref<1x64x32xbf16, #tpu.memory_space<vmem>>, %arg8: memref<1x6x64xf32, #tpu.memory_space<vmem>>, %arg9: memref<1x4x32xf32, #tpu.memory_space<vmem>>, %arg10: memref<1x2x128xf32, #tpu.memory_space<vmem>>, %arg11: memref<2x8x32xf32, #tpu.memory_space<vmem>>) attributes {dimension_semantics = [#tpu.dimension_semantics<parallel>, #tpu.dimension_semantics<arbitrary>], iteration_bounds = array<i64: 2, 2>, scalar_prefetch = 0 : i64, scratch_operands = 1 : i64, tpu.core_type = #tpu.core_type<tc>, window_params = [{transform_indices = @transform_0, window_bounds = array<i64: 1, 2, 8, 32>}, {transform_indices = @transform_1, window_bounds = array<i64: 1, 2, 8>}, {transform_indices = @transform_2, window_bounds = array<i64: 1, 3, 32, 32>}, {transform_indices = @transform_3, window_bounds = array<i64: 1, 32, 32>}, {transform_indices = @transform_4, window_bounds = array<i64: 1, 32, 64>}, {transform_indices = @transform_5, window_bounds = array<i64: 1, 64, 32>}, {transform_indices = @transform_6, window_bounds = array<i64: 1, 6, 64>}, {transform_indices = @transform_7, window_bounds = array<i64: 1, 4, 32>}, {transform_indices = @transform_8, window_bounds = array<i64: 1, 2, 128>}]} {
    %c0_i32 = arith.constant 0 : i32
    %0 = arith.cmpi eq, %arg1, %c0_i32 : i32
    %1 = arith.extui %0 : i1 to i32
    %c0_i32_0 = arith.constant 0 : i32
    %2 = arith.cmpi ne, %1, %c0_i32_0 : i32
    scf.if %2 {
      %c0_61 = arith.constant 0 : index
      %c0_62 = arith.constant 0 : index
      %c0_63 = arith.constant 0 : index
      %c0_64 = arith.constant 0 : index
      %148 = vector.load %arg2[%c0_61, %c0_62, %c0_63, %c0_64] : memref<1x2x8x32xf32, #tpu.memory_space<vmem>>, vector<1x2x8x32xf32>
      %149 = vector.shape_cast %148 : vector<1x2x8x32xf32> to vector<2x8x32xf32>
      %c0_65 = arith.constant 0 : index
      %c0_66 = arith.constant 0 : index
      %c0_67 = arith.constant 0 : index
      %150 = vector.load %arg11[%c0_65, %c0_66, %c0_67] : memref<2x8x32xf32, #tpu.memory_space<vmem>>, vector<2x8x32xf32>
      tpu.vector_store %arg11[%c0_65, %c0_66, %c0_67], %149 {strides = array<i32>} : memref<2x8x32xf32, #tpu.memory_space<vmem>>, vector<2x8x32xf32>,
    } else {
    }
    %c0 = arith.constant 0 : index
    %c0_1 = arith.constant 0 : index
    %c0_2 = arith.constant 0 : index
    %3 = vector.load %arg11[%c0, %c0_1, %c0_2] : memref<2x8x32xf32, #tpu.memory_space<vmem>>, vector<2x8x32xf32>
    %c0_3 = arith.constant 0 : index
    %c0_4 = arith.constant 0 : index
    %c0_5 = arith.constant 0 : index
    %4 = vector.load %arg3[%c0_3, %c0_4, %c0_5] : memref<1x2x8xf32, #tpu.memory_space<vmem>>, vector<1x2x8xf32>
    %5 = vector.shape_cast %4 : vector<1x2x8xf32> to vector<2x8xf32>
    %cst = arith.constant 1.000000e+00 : f32
    %6 = vector.broadcast %cst : f32 to vector<2x8xf32>
    %7 = arith.subf %6, %5 : vector<2x8xf32>
    %8 = vector.shape_cast %7 : vector<2x8xf32> to vector<2x1x8xf32>
    %cst_6 = arith.constant -1.000000e+09 : f32
    %9 = vector.broadcast %cst_6 : f32 to vector<2x1x8xf32>
    %10 = arith.mulf %8, %9 : vector<2x1x8xf32>
    %c0_7 = arith.constant 0 : index
    %c0_8 = arith.constant 0 : index
    %c0_9 = arith.constant 0 : index
    %c0_10 = arith.constant 0 : index
    %11 = vector.load %arg4[%c0_7, %c0_8, %c0_9, %c0_10] : memref<1x3x32x32xbf16, #tpu.memory_space<vmem>>, vector<1x1x32x32xbf16>
    %12 = vector.shape_cast %11 : vector<1x1x32x32xbf16> to vector<32x32xbf16>
    %c0_11 = arith.constant 0 : index
    %c1 = arith.constant 1 : index
    %c0_12 = arith.constant 0 : index
    %c0_13 = arith.constant 0 : index
    %13 = vector.load %arg4[%c0_11, %c1, %c0_12, %c0_13] : memref<1x3x32x32xbf16, #tpu.memory_space<vmem>>, vector<1x1x32x32xbf16>
    %14 = vector.shape_cast %13 : vector<1x1x32x32xbf16> to vector<32x32xbf16>
    %c0_14 = arith.constant 0 : index
    %c2 = arith.constant 2 : index
    %c0_15 = arith.constant 0 : index
    %c0_16 = arith.constant 0 : index
    %15 = vector.load %arg4[%c0_14, %c2, %c0_15, %c0_16] : memref<1x3x32x32xbf16, #tpu.memory_space<vmem>>, vector<1x1x32x32xbf16>
    %16 = vector.shape_cast %15 : vector<1x1x32x32xbf16> to vector<32x32xbf16>
    %c0_17 = arith.constant 0 : index
    %c0_18 = arith.constant 0 : index
    %c0_19 = arith.constant 0 : index
    %17 = vector.load %arg5[%c0_17, %c0_18, %c0_19] : memref<1x32x32xbf16, #tpu.memory_space<vmem>>, vector<1x32x32xbf16>
    %18 = vector.shape_cast %17 : vector<1x32x32xbf16> to vector<32x32xbf16>
    %c0_20 = arith.constant 0 : index
    %c0_21 = arith.constant 0 : index
    %c0_22 = arith.constant 0 : index
    %19 = vector.load %arg6[%c0_20, %c0_21, %c0_22] : memref<1x32x64xbf16, #tpu.memory_space<vmem>>, vector<1x32x64xbf16>
    %20 = vector.shape_cast %19 : vector<1x32x64xbf16> to vector<32x64xbf16>
    %c0_23 = arith.constant 0 : index
    %c0_24 = arith.constant 0 : index
    %c0_25 = arith.constant 0 : index
    %21 = vector.load %arg7[%c0_23, %c0_24, %c0_25] : memref<1x64x32xbf16, #tpu.memory_space<vmem>>, vector<1x64x32xbf16>
    %22 = vector.shape_cast %21 : vector<1x64x32xbf16> to vector<64x32xbf16>
    %c0_26 = arith.constant 0 : index
    %c0_27 = arith.constant 0 : index
    %c0_28 = arith.constant 0 : index
    %23 = vector.load %arg8[%c0_26, %c0_27, %c0_28] : memref<1x6x64xf32, #tpu.memory_space<vmem>>, vector<1x6x64xf32>
    %24 = vector.shape_cast %23 : vector<1x6x64xf32> to vector<6x64xf32>
    %25 = vector.extract_strided_slice %24 {offsets = [0, 0], sizes = [1, 32], strides = [1, 1]} : vector<6x64xf32> to vector<1x32xf32>
    %26 = vector.extract_strided_slice %24 {offsets = [1, 0], sizes = [1, 32], strides = [1, 1]} : vector<6x64xf32> to vector<1x32xf32>
    %27 = vector.extract_strided_slice %24 {offsets = [2, 0], sizes = [1, 32], strides = [1, 1]} : vector<6x64xf32> to vector<1x32xf32>
    %28 = vector.extract_strided_slice %24 {offsets = [3, 0], sizes = [1, 32], strides = [1, 1]} : vector<6x64xf32> to vector<1x32xf32>
    %29 = vector.extract_strided_slice %24 {offsets = [4, 0], sizes = [1, 64], strides = [1, 1]} : vector<6x64xf32> to vector<1x64xf32>
    %30 = vector.extract_strided_slice %24 {offsets = [5, 0], sizes = [1, 32], strides = [1, 1]} : vector<6x64xf32> to vector<1x32xf32>
    %c0_29 = arith.constant 0 : index
    %c0_30 = arith.constant 0 : index
    %c0_31 = arith.constant 0 : index
    %31 = vector.load %arg9[%c0_29, %c0_30, %c0_31] : memref<1x4x32xf32, #tpu.memory_space<vmem>>, vector<1x4x32xf32>
    %32 = vector.shape_cast %31 : vector<1x4x32xf32> to vector<4x32xf32>
    %33 = vector.extract_strided_slice %32 {offsets = [0, 0], sizes = [1, 32], strides = [1, 1]} : vector<4x32xf32> to vector<1x32xf32>
    %34 = vector.extract_strided_slice %32 {offsets = [1, 0], sizes = [1, 32], strides = [1, 1]} : vector<4x32xf32> to vector<1x32xf32>
    %35 = vector.extract_strided_slice %32 {offsets = [2, 0], sizes = [1, 32], strides = [1, 1]} : vector<4x32xf32> to vector<1x32xf32>
    %36 = vector.extract_strided_slice %32 {offsets = [3, 0], sizes = [1, 32], strides = [1, 1]} : vector<4x32xf32> to vector<1x32xf32>
    %37 = vector.shape_cast %3 : vector<2x8x32xf32> to vector<16x32xf32>
    %38 = arith.truncf %37 : vector<16x32xf32> to vector<16x32xbf16>
    %cst_32 = arith.constant dense<0.000000e+00> : vector<16x32xf32>
    %39 = tpu.matmul %38, %12, %cst_32 {dimension_numbers = #tpu.dot_dimension_numbers<[1], [0], [0], [1], [0, 0, 1, 1], [], []>} : vector<16x32xbf16>, vector<32x32xbf16>, vector<16x32xf32> -> vector<16x32xf32>
    %40 = vector.broadcast %25 : vector<1x32xf32> to vector<16x32xf32>
    %41 = arith.addf %39, %40 : vector<16x32xf32>
    %42 = vector.shape_cast %41 : vector<16x32xf32> to vector<2x8x32xf32>
    %cst_33 = arith.constant dense<0.000000e+00> : vector<16x32xf32>
    %43 = tpu.matmul %38, %14, %cst_33 {dimension_numbers = #tpu.dot_dimension_numbers<[1], [0], [0], [1], [0, 0, 1, 1], [], []>} : vector<16x32xbf16>, vector<32x32xbf16>, vector<16x32xf32> -> vector<16x32xf32>
    %44 = vector.broadcast %26 : vector<1x32xf32> to vector<16x32xf32>
    %45 = arith.addf %43, %44 : vector<16x32xf32>
    %46 = vector.shape_cast %45 : vector<16x32xf32> to vector<2x8x32xf32>
    %cst_34 = arith.constant dense<0.000000e+00> : vector<16x32xf32>
    %47 = tpu.matmul %38, %16, %cst_34 {dimension_numbers = #tpu.dot_dimension_numbers<[1], [0], [0], [1], [0, 0, 1, 1], [], []>} : vector<16x32xbf16>, vector<32x32xbf16>, vector<16x32xf32> -> vector<16x32xf32>
    %48 = vector.broadcast %27 : vector<1x32xf32> to vector<16x32xf32>
    %49 = arith.addf %47, %48 : vector<16x32xf32>
    %50 = vector.shape_cast %49 : vector<16x32xf32> to vector<2x8x32xf32>
    %51 = arith.truncf %42 : vector<2x8x32xf32> to vector<2x8x32xbf16>
    %52 = arith.truncf %46 : vector<2x8x32xf32> to vector<2x8x32xbf16>
    "tpu.trace_start"() <{level = 10 : i32, message = "bqd,bkd->bqk"}> : () -> ()
    %cst_35 = arith.constant dense<0.000000e+00> : vector<2x8x8xf32>
    %53 = tpu.matmul %51, %52, %cst_35 {dimension_numbers = #tpu.dot_dimension_numbers<[2], [2], [1], [1], [0, 0, 0, 1, 1, 1], [0], [0]>} : vector<2x8x32xbf16>, vector<2x8x32xbf16>, vector<2x8x8xf32> -> vector<2x8x8xf32>
    "tpu.trace_stop"() : () -> ()
    %cst_36 = arith.constant 0.176776692 : f32
    %54 = vector.broadcast %cst_36 : f32 to vector<2x8x8xf32>
    %55 = arith.mulf %53, %54 : vector<2x8x8xf32>
    %56 = vector.broadcast %10 : vector<2x1x8xf32> to vector<2x8x8xf32>
    %57 = arith.addf %55, %56 : vector<2x8x8xf32>
    %cst_37 = arith.constant dense<0xFF800000> : vector<2x8xf32>
    %58 = vector.multi_reduction <maximumf>, %57, %cst_37 [2] : vector<2x8x8xf32> to vector<2x8xf32>
    %59 = vector.shape_cast %58 : vector<2x8xf32> to vector<2x8x1xf32>
    %60 = vector.broadcast %59 : vector<2x8x1xf32> to vector<2x8x8xf32>
    %61 = arith.subf %57, %60 : vector<2x8x8xf32>
    %62 = math.exp %61 : vector<2x8x8xf32>
    %cst_38 = arith.constant dense<0.000000e+00> : vector<2x8xf32>
    %63 = vector.multi_reduction <add>, %62, %cst_38 [2] : vector<2x8x8xf32> to vector<2x8xf32>
    %64 = vector.shape_cast %63 : vector<2x8xf32> to vector<2x8x1xf32>
    %65 = tpu.reciprocal %64 {approx = true} : vector<2x8x1xf32> -> vector<2x8x1xf32>
    %66 = vector.broadcast %65 : vector<2x8x1xf32> to vector<2x8x8xf32>
    %67 = arith.mulf %62, %66 : vector<2x8x8xf32>
    %68 = arith.truncf %67 : vector<2x8x8xf32> to vector<2x8x8xbf16>
    %69 = arith.truncf %50 : vector<2x8x32xf32> to vector<2x8x32xbf16>
    "tpu.trace_start"() <{level = 10 : i32, message = "bqk,bkd->bqd"}> : () -> ()
    %cst_39 = arith.constant dense<0.000000e+00> : vector<2x8x32xf32>
    %70 = tpu.matmul %68, %69, %cst_39 {dimension_numbers = #tpu.dot_dimension_numbers<[2], [1], [1], [2], [0, 0, 0, 1, 1, 2], [0], [0]>} : vector<2x8x8xbf16>, vector<2x8x32xbf16>, vector<2x8x32xf32> -> vector<2x8x32xf32>
    "tpu.trace_stop"() : () -> ()
    %71 = vector.shape_cast %70 : vector<2x8x32xf32> to vector<16x32xf32>
    %72 = arith.truncf %71 : vector<16x32xf32> to vector<16x32xbf16>
    %cst_40 = arith.constant dense<0.000000e+00> : vector<16x32xf32>
    %73 = tpu.matmul %72, %18, %cst_40 {dimension_numbers = #tpu.dot_dimension_numbers<[1], [0], [0], [1], [0, 0, 1, 1], [], []>} : vector<16x32xbf16>, vector<32x32xbf16>, vector<16x32xf32> -> vector<16x32xf32>
    %74 = vector.broadcast %28 : vector<1x32xf32> to vector<16x32xf32>
    %75 = arith.addf %73, %74 : vector<16x32xf32>
    %76 = arith.addf %37, %75 : vector<16x32xf32>
    %cst_41 = arith.constant dense<0.000000e+00> : vector<16xf32>
    %77 = vector.multi_reduction <add>, %76, %cst_41 [1] : vector<16x32xf32> to vector<16xf32>
    %78 = vector.shape_cast %77 : vector<16xf32> to vector<16x1xf32>
    %cst_42 = arith.constant 3.200000e+01 : f32
    %79 = vector.broadcast %cst_42 : f32 to vector<16x1xf32>
    %80 = arith.divf %78, %79 : vector<16x1xf32>
    %81 = vector.broadcast %80 : vector<16x1xf32> to vector<16x32xf32>
    %82 = arith.subf %76, %81 : vector<16x32xf32>
    %83 = arith.mulf %82, %82 : vector<16x32xf32>
    %cst_43 = arith.constant dense<0.000000e+00> : vector<16xf32>
    %84 = vector.multi_reduction <add>, %83, %cst_43 [1] : vector<16x32xf32> to vector<16xf32>
    %85 = vector.shape_cast %84 : vector<16xf32> to vector<16x1xf32>
    %cst_44 = arith.constant 3.200000e+01 : f32
    %86 = vector.broadcast %cst_44 : f32 to vector<16x1xf32>
    %87 = arith.divf %85, %86 : vector<16x1xf32>
    %88 = vector.broadcast %80 : vector<16x1xf32> to vector<16x32xf32>
    %89 = arith.subf %76, %88 : vector<16x32xf32>
    %cst_45 = arith.constant 9.99999974E-6 : f32
    %90 = vector.broadcast %cst_45 : f32 to vector<16x1xf32>
    %91 = arith.addf %87, %90 : vector<16x1xf32>
    %92 = math.rsqrt %91 : vector<16x1xf32>
    %93 = vector.broadcast %92 : vector<16x1xf32> to vector<16x32xf32>
    %94 = arith.mulf %89, %93 : vector<16x32xf32>
    %95 = vector.broadcast %33 : vector<1x32xf32> to vector<16x32xf32>
    %96 = arith.mulf %94, %95 : vector<16x32xf32>
    %97 = vector.broadcast %34 : vector<1x32xf32> to vector<16x32xf32>
    %98 = arith.addf %96, %97 : vector<16x32xf32>
    %99 = arith.truncf %98 : vector<16x32xf32> to vector<16x32xbf16>
    %cst_46 = arith.constant dense<0.000000e+00> : vector<16x64xf32>
    %100 = tpu.matmul %99, %20, %cst_46 {dimension_numbers = #tpu.dot_dimension_numbers<[1], [0], [0], [1], [0, 0, 1, 1], [], []>} : vector<16x32xbf16>, vector<32x64xbf16>, vector<16x64xf32> -> vector<16x64xf32>
    %101 = vector.broadcast %29 : vector<1x64xf32> to vector<16x64xf32>
    %102 = arith.addf %100, %101 : vector<16x64xf32>
    %103 = arith.mulf %102, %102 : vector<16x64xf32>
    %104 = arith.mulf %102, %103 : vector<16x64xf32>
    %cst_47 = arith.constant 4.471500e-02 : f32
    %105 = vector.broadcast %cst_47 : f32 to vector<16x64xf32>
    %106 = arith.mulf %105, %104 : vector<16x64xf32>
    %107 = arith.addf %102, %106 : vector<16x64xf32>
    %cst_48 = arith.constant 0.797884583 : f32
    %108 = vector.broadcast %cst_48 : f32 to vector<16x64xf32>
    %109 = arith.mulf %108, %107 : vector<16x64xf32>
    %110 = math.tanh %109 : vector<16x64xf32>
    %cst_49 = arith.constant 1.000000e+00 : f32
    %111 = vector.broadcast %cst_49 : f32 to vector<16x64xf32>
    %112 = arith.addf %111, %110 : vector<16x64xf32>
    %cst_50 = arith.constant 5.000000e-01 : f32
    %113 = vector.broadcast %cst_50 : f32 to vector<16x64xf32>
    %114 = arith.mulf %113, %112 : vector<16x64xf32>
    %115 = arith.mulf %102, %114 : vector<16x64xf32>
    %116 = arith.truncf %115 : vector<16x64xf32> to vector<16x64xbf16>
    %cst_51 = arith.constant dense<0.000000e+00> : vector<16x32xf32>
    %117 = tpu.matmul %116, %22, %cst_51 {dimension_numbers = #tpu.dot_dimension_numbers<[1], [0], [0], [1], [0, 0, 1, 1], [], []>} : vector<16x64xbf16>, vector<64x32xbf16>, vector<16x32xf32> -> vector<16x32xf32>
    %118 = vector.broadcast %30 : vector<1x32xf32> to vector<16x32xf32>
    %119 = arith.addf %117, %118 : vector<16x32xf32>
    %120 = arith.addf %98, %119 : vector<16x32xf32>
    %cst_52 = arith.constant dense<0.000000e+00> : vector<16xf32>
    %121 = vector.multi_reduction <add>, %120, %cst_52 [1] : vector<16x32xf32> to vector<16xf32>
    %122 = vector.shape_cast %121 : vector<16xf32> to vector<16x1xf32>
    %cst_53 = arith.constant 3.200000e+01 : f32
    %123 = vector.broadcast %cst_53 : f32 to vector<16x1xf32>
    %124 = arith.divf %122, %123 : vector<16x1xf32>
    %125 = vector.broadcast %124 : vector<16x1xf32> to vector<16x32xf32>
    %126 = arith.subf %120, %125 : vector<16x32xf32>
    %127 = arith.mulf %126, %126 : vector<16x32xf32>
    %cst_54 = arith.constant dense<0.000000e+00> : vector<16xf32>
    %128 = vector.multi_reduction <add>, %127, %cst_54 [1] : vector<16x32xf32> to vector<16xf32>
    %129 = vector.shape_cast %128 : vector<16xf32> to vector<16x1xf32>
    %cst_55 = arith.constant 3.200000e+01 : f32
    %130 = vector.broadcast %cst_55 : f32 to vector<16x1xf32>
    %131 = arith.divf %129, %130 : vector<16x1xf32>
    %132 = vector.broadcast %124 : vector<16x1xf32> to vector<16x32xf32>
    %133 = arith.subf %120, %132 : vector<16x32xf32>
    %cst_56 = arith.constant 9.99999974E-6 : f32
    %134 = vector.broadcast %cst_56 : f32 to vector<16x1xf32>
    %135 = arith.addf %131, %134 : vector<16x1xf32>
    %136 = math.rsqrt %135 : vector<16x1xf32>
    %137 = vector.broadcast %136 : vector<16x1xf32> to vector<16x32xf32>
    %138 = arith.mulf %133, %137 : vector<16x32xf32>
    %139 = vector.broadcast %35 : vector<1x32xf32> to vector<16x32xf32>
    %140 = arith.mulf %138, %139 : vector<16x32xf32>
    %141 = vector.broadcast %36 : vector<1x32xf32> to vector<16x32xf32>
    %142 = arith.addf %140, %141 : vector<16x32xf32>
    %143 = vector.shape_cast %142 : vector<16x32xf32> to vector<2x8x32xf32>
    %c0_57 = arith.constant 0 : index
    %c0_58 = arith.constant 0 : index
    %c0_59 = arith.constant 0 : index
    %144 = vector.load %arg11[%c0_57, %c0_58, %c0_59] : memref<2x8x32xf32, #tpu.memory_space<vmem>>, vector<2x8x32xf32>
    tpu.vector_store %arg11[%c0_57, %c0_58, %c0_59], %143 {strides = array<i32>} : memref<2x8x32xf32, #tpu.memory_space<vmem>>, vector<2x8x32xf32>,
    %c1_i32 = arith.constant 1 : i32
    %145 = arith.cmpi eq, %arg1, %c1_i32 : i32
    %146 = arith.extui %145 : i1 to i32
    %c0_i32_60 = arith.constant 0 : i32
    %147 = arith.cmpi ne, %146, %c0_i32_60 : i32
    scf.if %147 {
      %148 = vector.shape_cast %5 : vector<2x8xf32> to vector<2x8x1xf32>
      %149 = vector.broadcast %148 : vector<2x8x1xf32> to vector<2x8x32xf32>
      %150 = arith.mulf %143, %149 : vector<2x8x32xf32>
      %cst_61 = arith.constant dense<0.000000e+00> : vector<2x32xf32>
      %151 = vector.multi_reduction <add>, %150, %cst_61 [1] : vector<2x8x32xf32> to vector<2x32xf32>
      %cst_62 = arith.constant dense<0.000000e+00> : vector<2xf32>
      %152 = vector.multi_reduction <add>, %5, %cst_62 [1] : vector<2x8xf32> to vector<2xf32>
      %153 = vector.shape_cast %152 : vector<2xf32> to vector<2x1xf32>
      %cst_63 = arith.constant 9.99999971E-10 : f32
      %154 = vector.broadcast %cst_63 : f32 to vector<2x1xf32>
      %155 = arith.maximumf %153, %154 : vector<2x1xf32>
      %156 = tpu.reciprocal %155 {approx = true} : vector<2x1xf32> -> vector<2x1xf32>
      %157 = vector.broadcast %156 : vector<2x1xf32> to vector<2x32xf32>
      %158 = arith.mulf %151, %157 : vector<2x32xf32>
      %159 = arith.mulf %158, %158 : vector<2x32xf32>
      %cst_64 = arith.constant dense<0.000000e+00> : vector<2xf32>
      %160 = vector.multi_reduction <add>, %159, %cst_64 [1] : vector<2x32xf32> to vector<2xf32>
      %161 = vector.shape_cast %160 : vector<2xf32> to vector<2x1xf32>
      %162 = math.sqrt %161 : vector<2x1xf32>
      %cst_65 = arith.constant 9.99999996E-13 : f32
      %163 = vector.broadcast %cst_65 : f32 to vector<2x1xf32>
      %164 = arith.maximumf %162, %163 : vector<2x1xf32>
      %165 = vector.broadcast %164 : vector<2x1xf32> to vector<2x32xf32>
      %166 = arith.divf %158, %165 : vector<2x32xf32>
      %cst_66 = arith.constant 0.000000e+00 : f32
      %167 = vector.broadcast %cst_66 : f32 to vector<2x96xf32>
      %168 = tpu.concatenate %166, %167 in 1 : vector<2x32xf32>, vector<2x96xf32> -> vector<2x128xf32>
      %169 = vector.shape_cast %168 : vector<2x128xf32> to vector<1x2x128xf32>
      %c0_67 = arith.constant 0 : index
      %c0_68 = arith.constant 0 : index
      %c0_69 = arith.constant 0 : index
      %170 = vector.load %arg10[%c0_67, %c0_68, %c0_69] : memref<1x2x128xf32, #tpu.memory_space<vmem>>, vector<1x2x128xf32>
      tpu.vector_store %arg10[%c0_67, %c0_68, %c0_69], %169 {strides = array<i32>} : memref<1x2x128xf32, #tpu.memory_space<vmem>>, vector<1x2x128xf32>,
    } else {
    }
    return
  }
  func.func @transform_0(%arg0: i32, %arg1: i32) -> (i32, i32, i32, i32) {
    %c0_i32 = arith.constant 0 : i32
    %c0_i32_0 = arith.constant 0 : i32
    %c0_i32_1 = arith.constant 0 : i32
    %c0_i32_2 = arith.constant 0 : i32
    return %arg0, %c0_i32, %c0_i32_0, %c0_i32_1 : i32, i32, i32, i32
  }
  func.func @transform_1(%arg0: i32, %arg1: i32) -> (i32, i32, i32) {
    %c0_i32 = arith.constant 0 : i32
    %c0_i32_0 = arith.constant 0 : i32
    %c0_i32_1 = arith.constant 0 : i32
    return %arg0, %c0_i32, %c0_i32_0 : i32, i32, i32
  }
  func.func @transform_2(%arg0: i32, %arg1: i32) -> (i32, i32, i32, i32) {
    %c0_i32 = arith.constant 0 : i32
    %c0_i32_0 = arith.constant 0 : i32
    %c0_i32_1 = arith.constant 0 : i32
    %c0_i32_2 = arith.constant 0 : i32
    return %arg1, %c0_i32, %c0_i32_0, %c0_i32_1 : i32, i32, i32, i32
  }
  func.func @transform_3(%arg0: i32, %arg1: i32) -> (i32, i32, i32) {
    %c0_i32 = arith.constant 0 : i32
    %c0_i32_0 = arith.constant 0 : i32
    %c0_i32_1 = arith.constant 0 : i32
    return %arg1, %c0_i32, %c0_i32_0 : i32, i32, i32
  }
  func.func @transform_4(%arg0: i32, %arg1: i32) -> (i32, i32, i32) {
    %c0_i32 = arith.constant 0 : i32
    %c0_i32_0 = arith.constant 0 : i32
    %c0_i32_1 = arith.constant 0 : i32
    return %arg1, %c0_i32, %c0_i32_0 : i32, i32, i32
  }
  func.func @transform_5(%arg0: i32, %arg1: i32) -> (i32, i32, i32) {
    %c0_i32 = arith.constant 0 : i32
    %c0_i32_0 = arith.constant 0 : i32
    %c0_i32_1 = arith.constant 0 : i32
    return %arg1, %c0_i32, %c0_i32_0 : i32, i32, i32
  }
  func.func @transform_6(%arg0: i32, %arg1: i32) -> (i32, i32, i32) {
    %c0_i32 = arith.constant 0 : i32
    %c0_i32_0 = arith.constant 0 : i32
    %c0_i32_1 = arith.constant 0 : i32
    return %arg1, %c0_i32, %c0_i32_0 : i32, i32, i32
  }
  func.func @transform_7(%arg0: i32, %arg1: i32) -> (i32, i32, i32) {
    %c0_i32 = arith.constant 0 : i32
    %c0_i32_0 = arith.constant 0 : i32
    %c0_i32_1 = arith.constant 0 : i32
    return %arg1, %c0_i32, %c0_i32_0 : i32, i32, i32
  }
  func.func @transform_8(%arg0: i32, %arg1: i32) -> (i32, i32, i32) {
    %c0_i32 = arith.constant 0 : i32
    %c0_i32_0 = arith.constant 0 : i32
    %c0_i32_1 = arith.constant 0 : i32
    return %arg0, %c0_i32, %c0_i32_0 : i32, i32, i32
  }
}

</mosaic_0001>

<bundles_post_ra>
// kernel: tpu_custom_call.1
= control target key start
LH: loop header
LB: loop body
LE: loop exit
PB: predicated region body
PF: predicated region fallthrough
CT: control target
= control target key end

     0   :  { %s2400_s0 = inlined_call_operand.hbm [shape: f32[2,2,8,32], index: 0, kind: input, shape index: {}]   ;;  %s2401_s1 = inlined_call_operand.hbm [shape: f32[2,2,8], index: 1, kind: input, shape index: {}]   ;;  %s2402_s2 = inlined_call_operand.vmem [shape: bf16[2,3,32,32], index: 2, kind: input, shape index: {}]   ;;  %s2403_s3 = inlined_call_operand.hbm [shape: bf16[2,32,32], index: 3, kind: input, shape index: {}]   ;;  %s2404_s4 = inlined_call_operand.hbm [shape: bf16[2,32,64], index: 4, kind: input, shape index: {}]   ;;  %s2405_s5 = inlined_call_operand.vmem [shape: bf16[2,64,32], index: 5, kind: input, shape index: {}]   ;;  %s2406_s6 = inlined_call_operand.vmem [shape: f32[2,6,64], index: 6, kind: input, shape index: {}]   ;;  %s2407_s7 = inlined_call_operand.hbm [shape: f32[2,4,32], index: 7, kind: input, shape index: {}]   ;;  %s2408_s8 = inlined_call_operand.hbm [shape: f32[2,2,128], index: 8, kind: output, shape index: {}]  }
   0x1   :  { %2429 = sst [smem:[#allocation34_spill]] %s2401_s1 }
   0x2   :  { %2430 = sst [smem:[#allocation35_spill]] %s2402_s2 }
   0x3   :  { %2431 = sst [smem:[#allocation36_spill]] %s2403_s3 }
   0x4   :  { %2432 = sst [smem:[#allocation37_spill]] %s2404_s4 }
   0x5   :  { %2433 = sst [smem:[#allocation38_spill]] %s2405_s5 }
   0x6   :  { %2434 = sst [smem:[#allocation39_spill]] %s2406_s6 }
   0x7   :  { %2435 = sst [smem:[#allocation40_spill]] %s2408_s8 }
   0x8   :  { %13 = vsyncpa [#allocation4], 0 }
   0x9   :  { %15 = vsyncpa [#allocation4 + $0x1], 0 }
   0xa   :  { %16 = vsyncpa [#allocation7], 0 }
   0xb   :  { %18 = vsyncpa [#allocation7 + $0x1], 0 }
   0xc   :  { %19 = vsyncpa [#allocation10], 0 }
   0xd   :  { %21 = vsyncpa [#allocation10 + $0x1], 0 }
   0xe   :  { %22 = vsyncpa [#allocation5], 0 }
   0xf   :  { %24 = vsyncpa [#allocation5 + $0x1], 0  ;;  %s1995_s27 = smov 0   ;;  %s1997_s28 = smov 0  }
  0x10   :  { %s1999_s29 = smov 0   ;;  %s2001_s30 = smov 0  }
  0x11   :  { %s2003_s9 = smov 0   ;;  %s2005_s10 = smov 0  }
  0x12   :  { %s2007_s11 = smov 0   ;;  %s2009_s12 = smov 0  }
  0x13   :  { %s2011_s13 = smov 0   ;;  %s2013_s14 = smov 0  }
  0x14   :  { %s2015_s15 = smov 0  }
  0x15 LB: > { %2436 = sst [smem:[#allocation18_spill]] %s1907_s28  ;;  %s2049_s16 = sadd.s32 4294967295, %s1943_s15   ;;  %s1943_s15 = sphi %s2015_s15, %s30_s15   ;;  %s1939_s14 = sphi %s2013_s14, %s2504_s14   ;;  %s1935_s13 = sphi %s2011_s13, %s2503_s13   ;;  %s1931_s12 = sphi %s2009_s12, %s2502_s12   ;;  %s1927_s11 = sphi %s2007_s11, %s2501_s11   ;;  %s1923_s10 = sphi %s2005_s10, %s2494_s10   ;;  %s1919_s9 = sphi %s2003_s9, %s2500_s9   ;;  %s1915_s30 = sphi %s2001_s30, %s2499_s30   ;;  %s1911_s29 = sphi %s1999_s29, %s2498_s29   ;;  %s1907_s28 = sphi %s1997_s28, %s2497_s28   ;;  %s1903_s27 = sphi %s1995_s27, %s2491_s27  }
  0x16   : > { %2437 = sst [smem:[#allocation19_spill]] %s1915_s30  ;;  %s1375_s17 = sadd.s32 4294967294, %s1943_s15  }
  0x17   : > { %2438 = sst [smem:[#allocation20_spill]] %s1923_s10  ;;  %p56_p0 = scmp.ne.s32.totalorder %s1923_s10, %s1919_s9 }
  0x18   : > { %2439 = sst [smem:[#allocation21_spill]] %s1927_s11  ;;  %p57_p1 = scmp.eq.s32.totalorder %s1943_s15, 0 }
  0x19   : > { %2440 = sst [smem:[#allocation22_spill]] %s1931_s12  ;;  %p62_p2 = scmp.ne.s32.totalorder %s1919_s9, %s1915_s30 }
  0x1a   : > { %2441 = sst [smem:[#allocation23_spill]] %s1943_s15  ;;  %p63_p3 = scmp.eq.s32.totalorder %s2049_s16, 0 }
  0x1b   : > { %2442 = sst [smem:[#allocation24_spill]] %s2049_s16  ;;  %p2063_p4 = por %p57_p1, %p56_p0 }
  0x1c   : > { %p2068_p5 = por %p63_p3, %p62_p2  ;;  %p134_p6 = scmp.ne.s32.totalorder %s1911_s29, %s1907_s28 }
  0x1d   : > { %p140_p7 = scmp.ne.s32.totalorder %s1907_s28, %s1903_s27  ;;  %p268_p8 = scmp.eq.s32.totalorder %s2049_s16, 3 }
  0x1e   : > { %s2444_s22 = scalar_select %p2068_p5, 1, 0 }
  0x1f   : > { %p2076_p9 = por %p134_p6, %p57_p1  ;;  %p274_p10 = scmp.eq.s32.totalorder %s1375_s17, 3 }
  0x20   : > { %2445 = sst [smem:[#allocation25_spill]] %s2444_s22  ;;  %p2080_p11 = por %p140_p7, %p63_p3 }
  0x21   : > { %p2087_p12 = por %p268_p8, %p56_p0  ;;  %p2091_p13 = por %p274_p10, %p62_p2 }
  0x22   : > { %s2447_s24 = scalar_select %p2080_p11, 1, 0 }
  0x23   : > { %s2449_s25 = scalar_select %p2087_p12, 1, 0 }
  0x24   : > { %2448 = sst [smem:[#allocation26_spill]] %s2447_s24  ;;  %p1533_p1 = scmp.lt.s32.totalorder %s1943_s15, 4 }
  0x25   : > { %2450 = sst [smem:[#allocation27_spill]] %s2449_s25  ;;  %s2097_s27 = sand.u32 1, %s1923_s10  }
  0x26   : > { %s2451_s26 = scalar_select %p2091_p13, 1, 0 }
  0x27   : > { %s2414_s19 = sand.u32 1, %s1943_s15   ;;  %p2105_p0 = pnand %p1533_p1, %p2063_p4 }
  0x28   : > { %2452 = sst [smem:[#allocation28_spill]] %s2451_s26  ;;  %s1381_s18 = sshll.u32 %s2097_s27, 1 }
  0x29   : > { %s1382_s26 = sshll.u32 %s1939_s14, 1  ;;  %s2454_s1 = sld [smem:[#allocation34_spill]] }
  0x2a   : > { %s320_s12 = scalar_lea.vmem [#allocation6], %s1381_s18  ;;  %p2118_p2 = pnand %p1533_p1, %p2076_p9 }
  0x2b   : > { %s328_s17 = sshll.u32 %s320_s12, 4  ;;  %s2124_s2 = scalar_lea.sflag [#allocation7], %s2414_s19  ;;  %s329_s17 = int_to_ptr.vmem [resolvable:$true] %s328_s17 }
  0x2c   : > { %p1391_p3 = scmp.ge.s32.totalorder %s1943_s15, 1  ;;  %p419_p4 = scmp.lt.s32.totalorder %s1943_s15, 5 }
  0x2d   : > { %s2415_s8 = sand.u32 1, %s1911_s29   ;;  %s39_s12 = sadd.s32 1, %s1935_s13 }
  0x2e   : > { %p2132_p6 = pnand %p1391_p3, %p419_p4  ;;  %s1383_s18 = sshll.u32 %s2415_s8, 4 }
  0x2f   : > { %s324_s25 = scalar_lea.hbm %s2454_s1, %s1382_s26  ;;  %p40_p7 = scmp.ge.s32.totalorder %s39_s12, 2 }
  0x30   : > { %s326_s6 = sshll.u32 %s324_s25, 4  ;;  %s1483_s23 = sshll.u32 %s1935_s13, 4  ;;  %s327_s6 = int_to_ptr.hbm [resolvable:$true] %s326_s6 }
  0x31   : > { %1519 = dma.hbm_to_vmem [thread:$0]  (!%p2105_p0), %s327_s6, 32, %s329_s17, %s2124_s2  }
  0x32   : > { %s347_s25 = scalar_lea.vmem [#allocation8], %s1383_s18  ;;  %s2506_s12 = smov (%p40_p7, %s39_s12), 0 }
  0x33   : > { %s2140_s26 = sshll.u32 %s347_s25, 4  ;;  %2458 = sst [smem:[#allocation30_spill]] %s2506_s12 }
  0x34   : > { %2457 = sst [smem:[#allocation29_spill]] %s2140_s26  ;;  %s2459_s6 = sadd.s32 1, %s1939_s14 }
  0x35   : > { %s2508_s6 = smov (!%p40_p7, %s2459_s6), %s1939_s14  ;;  %s124_s17 = ssub.s32 %s1935_s13, %s2506_s12 }
  0x36   : > { %s2460_s3 = sld [smem:[#allocation36_spill]]  ;;  %p44_p8 = scmp.ge.s32.totalorder %s2508_s6, 2 }
  0x37   : > { %p125_p9 = scmp.eq.s32.totalorder %s124_s17, 0  ;;  %s2462_s25 = sadd.s32 1, %s1911_s29 }
  0x38   : > { %s2510_s6 = smov (%p44_p8, %s2508_s6), 0  ;;  %s2464_s1 = sadd.s32 1, %s1923_s10 }
  0x39   : > { %2461 = sst [smem:[#allocation31_spill]] %s2510_s6  ;;  %s46_s24 = ssub.s32 %s1939_s14, %s2510_s6 }
  0x3a   : > { %s2158_s11 = scalar_select %p125_p9, %s1911_s29, %s2462_s25  }
  0x3b   : > { %p47_p10 = scmp.eq.s32.totalorder %s46_s24, 0  ;;  %s2466_s4 = sld [smem:[#allocation37_spill]] }
  0x3c   : > { %s352_s5 = scalar_lea.hbm %s2460_s3, %s1483_s23  ;;  %2463 = sst [smem:[#allocation32_spill]] %s2158_s11 }
  0x3d   : > { %s353_s8 = sshll.u32 %s352_s5, 4  ;;  %s369_s26 = scalar_lea.vmem [#allocation9], %s1383_s18  ;;  %s2162_s8 = int_to_ptr.hbm [resolvable:$true] %s353_s8 }
  0x3e   : > { %s2167_s19 = scalar_select %p47_p10, %s1923_s10, %s2464_s1  }
  0x3f   : > { %s377_s12 = sshll.u32 %s369_s26, 4  ;;  %s2467_s25 = sand.u32 1, %s1943_s15   ;;  %s378_s12 = int_to_ptr.vmem [resolvable:$true] %s377_s12 }
  0x40   : > { %2465 = sst [smem:[#allocation33_spill]] %s2167_s19  ;;  %s366_s6 = scalar_lea.sflag [#allocation10], %s2467_s25 }
  0x41   : > { %s374_s5 = scalar_lea.hbm %s2466_s4, %s1483_s23  ;;  %s2468_s24 = sld [smem:[#allocation29_spill]] }
  0x42   : > { %s375_s28 = sshll.u32 %s374_s5, 4  ;;  %s1945_s1 = smov 64   ;;  %s376_s28 = int_to_ptr.hbm [resolvable:$true] %s375_s28 }
  0x43   : > { %s1946_s19 = smov 4   ;;  %s1482_s3 = sshll.u32 %s1939_s14, 4 }
  0x44   : > { %1525 = dma.hbm_to_vmem [thread:$0]  (!%p2118_p2), %s376_s28, 256, %s378_s12, %s366_s6, %s1945_s1, %s1945_s1, %s1946_s19  }
  0x45   : > { %s303_s26 = scalar_lea.hbm %s2400_s0, %s1482_s3  ;;  %s2469_s17 = sshll.u32 %s2097_s27, 4 }
  0x46   : > { %s298_s5 = scalar_lea.vmem [#allocation3], %s2469_s17  ;;  %s304_s10 = sshll.u32 %s303_s26, 4  ;;  %s305_s10 = int_to_ptr.hbm [resolvable:$true] %s304_s10 }
  0x47   : > { %s306_s4 = sshll.u32 %s298_s5, 4  ;;  %s2470_s25 = sand.u32 1, %s1911_s29   ;;  %s307_s4 = int_to_ptr.vmem [resolvable:$true] %s306_s4 }
  0x48   : > { %s1389_s11 = sshll.u32 %s2470_s25, 2  ;;  %s295_s15 = scalar_lea.sflag [#allocation4], %s2097_s27 }
  0x49   : > { %s1947_s16 = smov 128   ;;  %s1948_s22 = smov 8  }
  0x4a   : > { %1516 = dma.hbm_to_vmem [thread:$0]  (!%p2105_p0), %s305_s10, 256, %s307_s4, %s295_s15, %s1947_s16, %s1947_s16, %s1948_s22  }
  0x4b   : > { %s2471_s28 = int_to_ptr.vmem [resolvable:$true] %s2468_s24  ;;  %s1390_s12 = sshll.u32 %s1935_s13, 2 }
  0x4c   : > { %1522 = dma.hbm_to_vmem [thread:$0]  (!%p2118_p2), %s2162_s8, 256, %s2471_s28, %s2124_s2, %s1945_s1, %s1945_s1, %s1946_s19  }
  0x4d   : > { %s410_s23 = scalar_lea.hbm %s2407_s7, %s1390_s12  ;;  %s406_s17 = scalar_lea.vmem [#allocation11], %s1389_s11 }
  0x4e   : > { %s414_s26 = sshll.u32 %s406_s17, 4  ;;  %s412_s5 = sshll.u32 %s410_s23, 4  ;;  %s415_s26 = int_to_ptr.vmem [resolvable:$true] %s414_s26  ;;  %s413_s5 = int_to_ptr.hbm [resolvable:$true] %s412_s5 }
  0x4f   : > { %1528 = dma.hbm_to_vmem [thread:$0]  (!%p2118_p2), %s413_s5, 64, %s415_s26, %s366_s6  }
  0x50   : > { %423 = sbr.rel (%p2132_p6) target bundleno = 2124 (0x84c), region = 52  ;;  %s2202_s10 = sand.u32 (!%p2132_p6), 1, %s1919_s9  }
  0x51   : > { %s1392_s2 = sshll.u32 (!%p2132_p6), %s2202_s10, 4  ;;  %s426_s15 = scalar_lea.sflag (!%p2132_p6), [#allocation4], %s2202_s10 }
  0x52   : > { %s2206_s16 = scalar_lea.vmem (!%p2132_p6), [#allocation3], %s1392_s2 }
  0x55   : > { %1882 = dma.done.wait (%p2068_p5), %s426_s15, 256  }
  0x56   : > { %1884 = vsyncadd (%p2068_p5), %s426_s15, 4294967040  ;;  %s2473_s11 = sld [smem:[#allocation24_spill]]  ;;  %s1393_s22 = sshll.u32 %s2202_s10, 1 }
  0x57   : > { %s2214_s20 = scalar_lea.vmem [#allocation6], %s1393_s22 }
  0x5c   : > { %s435_s21 = sand.u32 1, %s2473_s11  }
  0x5d   : > { %s436_s27 = scalar_lea.sflag [#allocation7], %s435_s21 }
  0x5e   : > { %1886 = dma.done.wait (%p2068_p5), %s436_s27, 32  }
  0x5f   : > { %1888 = vsyncadd (%p2068_p5), %s436_s27, 4294967264  ;;  %s2474_s8 = sld [smem:[#allocation18_spill]] }
  0x65   : > { %s447_s6 = sand.u32 1, %s2474_s8  }
  0x66   : > { %s2221_s19 = sshll.u32 %s447_s6, 4 }
  0x67   : > { %1890 = dma.done.wait (%p2080_p11), %s436_s27, 256  }
  0x68   : > { %1892 = vsyncadd (%p2080_p11), %s436_s27, 4294967040  ;;  %s456_s1 = scalar_lea.sflag [#allocation10], %s435_s21 }
  0x69   : > { %1894 = dma.done.wait (%p2080_p11), %s456_s1, 320  }
  0x6a   : > { %1896 = vsyncadd (%p2080_p11), %s456_s1, 4294966976  ;;  %s2476_s28 = sld [smem:[#allocation21_spill]]  ;;  %s2233_s12 = sshll.u32 %s447_s6, 2 }
  0x6b   : > { %s2477_s5 = sld [smem:[#allocation38_spill]]  ;;  %s469_s25 = scalar_lea.vmem [#allocation11], %s2233_s12 }
  0x6c   : > { %s2478_s21 = sld [smem:[#allocation35_spill]]  ;;  %s2251_s24 = scalar_lea.vmem [#allocation12], %s1393_s22 }
  0x6d   : > { %s2479_s6 = sld [smem:[#allocation39_spill]] }
  0x70   : > { %p537_p5 = scmp.lt.s32.totalorder %s2476_s28, 1  ;;  %p1402_p11 = scmp.ne.s32.totalorder %s2476_s28, 0 }
  0x72   : > { %s538_s18 = scalar_select %p537_p5, %s2476_s28, 1 }
  0x73   : > { %555 = sbr.rel (%p1402_p11) target bundleno = 123 (0x7b), region = 76 }
  0x74   : > { %s1500_s3 = smul.u32 48, %s538_s18  ;;  %s1485_s23 = sshll.u32 %s538_s18, 5 }
  0x75   : > { %s2240_s4 = scalar_lea.vmem %s2477_s5, %s1485_s23  ;;  %s1401_s2 = sshll.u32 %s538_s18, 3 }
  0x76   : > { %s2245_s27 = scalar_lea.vmem %s2478_s21, %s1500_s3  ;;  %s550_s1 = scalar_lea.vmem %s2479_s6, %s1401_s2 }
  0x78   : > { %v556_v0 = vld [vmem:[%s2206_s16] sm:$0xff]  ;;  %vm558_vm0 = vcmask 261120   ;;  %v557_v1 = vld [vmem:[%s2206_s16 + $0x8] sm:$0xff] }
  0x79   : > { %559 = vst.msk [vmem:[#allocation2] sm:$0xff] %vm558_vm0, %v556_v0 }
  0x7a   : > { %560 = vst.msk [vmem:[#allocation2 + $0x8] sm:$0xff] %vm558_vm0, %v557_v1 }
  0x7b PF: > { %v1489_v2 = vld [vmem:[%s2245_s27 + $0x18] sm:$0xff]  ;;  %v1487_v3 = vld [vmem:[%s2245_s27 + $0x8] sm:$0xff]  ;;  %v1488_v4 = vld [vmem:[%s2245_s27 + $0x10] sm:$0xff]  ;;  %vm616_vm1 = vcmask 261120   ;;  %vm740_vm2 = vcmask 64512   ;;  %vm770_vm3 = vcmask 1043456  }
  0x7c   : > { %653 = vmatpush.bf16.msra.mxu1 %v1489_v2  ;;  %626 = vmatpush.bf16.msra.mxu0 %v1487_v3  ;;  %v1486_v7 = vld [vmem:[%s2245_s27] sm:$0xff]  ;;  %v1491_v26 = vld [vmem:[%s2245_s27 + $0x28] sm:$0xff]  ;;  %v2278_v27 = vld [vmem:[%s2214_s20] sm:$0x3]  ;;  %s2480_s16 = scalar_lea.vmem [#allocation8], %s2221_s19  ;;  %s2482_s20 = scalar_lea.vmem [#allocation9], %s2221_s19 }
  0x7d   : > { %v2268_v9 = vld [vmem:[%s550_s1] sm:$0x3f]  ;;  %680 = vmatpush.bf16.msra.mxu2 %v1491_v26  ;;  %v564_v29 = vsub.f32 1.0, %v2278_v27  ;;  %s2481_s22 = smov %s2480_s16  ;;  %s2483_s28 = smov %s2482_s20  ;;  %vm971_vm11 = vcmask 523264  }
  0x7e   : > { %v634_v10 = vperm.slane %v2268_v9, 1  ;;  %v603_v13 = vperm.slane %v2268_v9, 0  ;;  %v1490_v28 = vld [vmem:[%s2245_s27 + $0x20] sm:$0xff]  ;;  %v661_v45 = vperm.slane %v2268_v9, 2  ;;  %s2484_s19 = sld [smem:[#allocation21_spill]] }
  0x7f   : > { %v566_v30 = vrot.slane %v564_v29, 1  ;;  %v568_v36 = vmul.f32 -1e+09, %v564_v29  ;;  %v1493_v0 = vld [vmem:[%s2480_s16 + $0x8] sm:$0xff] }
  0x80   : > { %v2259_v5 = vld [vmem:[#allocation2] sm:$0xff]  ;;  %654 = vmatpush.bf16.msra.mxu1 %v1488_v4  ;;  %627 = vmatpush.bf16.msra.mxu0 %v1486_v7 }
  0x81   : > { %v2261_v6 = vld [vmem:[#allocation2 + $0x8] sm:$0xff]  ;;  %681 = vmatpush.bf16.msra.mxu2 %v1490_v28  ;;  %v569_v31 = vmul.f32 -1e+09, %v566_v30  ;;  %v734_v40 = vperm.slane %v568_v36, 0  ;;  %v1949_v28 = vmov 32.0  }
  0x82   : > { %v602_v8 = vpack.c.bf16 %v2261_v6, %v2259_v5 }
  0x83   : > { %v735_v33 = vperm.slane %v569_v31, 0 }
  0x84   : > { %1428 = vmatmul.msk.bf16.vlgmr.msra.gmra.mxu1 %vm616_vm1, %v602_v8  ;;  %1419 = vmatmul.msk.bf16.vlgmr.msra.gmra.mxu0 %vm616_vm1, %v602_v8  ;;  %p1477_p1 = scmp.ne.s32.totalorder %s2484_s19, 1 }
  0x85   : > { %1437 = vmatmul.msk.bf16.vlgmr.msra.gmra.mxu2 %vm616_vm1, %v602_v8 }
 0x101   : > { %v656_v11 = vpop.f32.mrf.mxu1  ;;  %v629_v14 = vpop.f32.mrf.mxu0 }
 0x102   : > { %v657_v12 = vadd.f32 %v656_v11, %v634_v10  ;;  %v630_v17 = vadd.f32 %v629_v14, %v603_v13 }
 0x104   : > { %v690_v15 = vpack.c.bf16 %v657_v12, %v657_v12  ;;  %v688_v19 = vpack.c.bf16 %v630_v17, %v630_v17  ;;  %v1492_v12 = vld [vmem:[%s2481_s22] sm:$0xff] }
 0x106   : > { %v696_v16 = vsel %vm616_vm1, %v690_v15, 0 }
 0x107   : > { %705 = vmatpush.bf16.xpose.msra.mxu3 %v696_v16 }
 0x108   : > { %v683_v48 = vpop.f32.mrf.mxu2 }
 0x109   : > { %v658_v18 = vpop.f32.mrf.mxu1  ;;  %v631_v22 = vpop.f32.mrf.mxu0  ;;  %v684_v49 = vadd.f32 %v683_v48, %v661_v45 }
 0x10a   : > { %v659_v20 = vadd.f32 %v658_v18, %v634_v10  ;;  %v632_v24 = vadd.f32 %v631_v22, %v603_v13  ;;  %v807_v18 = vperm.slane %v2268_v9, 3 }
 0x10b   : > { %v765_v51 = vpack.c.bf16 %v684_v49, %v684_v49 }
 0x10c   : > { %v691_v21 = vpack.c.bf16 %v659_v20, %v659_v20  ;;  %v689_v25 = vpack.c.bf16 %v632_v24, %v632_v24 }
 0x10d   : > { %v772_v52 = vsel %vm770_vm3, %v765_v51, 0 }
 0x10e   : > { %1438 = vmatmul.msk.bf16.vlgmr.msra.gmra.mxu3 %vm616_vm1, %v688_v19  ;;  %v715_v23 = vsel %vm616_vm1, %v691_v21, 0  ;;  %781 = vmatpush.bf16.msrb.mxu1 %v772_v52 }
 0x10f   : > { %724 = vmatpush.bf16.xpose.msrb.mxu0 %v715_v23  ;;  %829 = vmatpush.bf16.msrb.mxu3 %v1493_v0 }
 0x110   : > { %v685_v55 = vpop.f32.mrf.mxu2 }
 0x111   : > { %v686_v56 = vadd.f32 %v685_v55, %v661_v45 }
 0x113   : > { %v766_v60 = vpack.c.bf16 %v686_v56, %v686_v56  ;;  %830 = vmatpush.bf16.msrb.mxu3 %v1492_v12 }
 0x115   : > { %v791_v61 = vsel %vm770_vm3, %v766_v60, 0  ;;  %v2314_v60 = vld [vmem:[%s469_s25] sm:$0xf] }
 0x116   : > { %1439 = vmatmul.msk.bf16.vlgmr.msrb.gmra.mxu0 %vm616_vm1, %v689_v25  ;;  %800 = vmatpush.bf16.msrb.mxu2 %v791_v61  ;;  %v890_v0 = vperm.slane %v2314_v60, 0 }
 0x191   : > { %v707_v32 = vpop.f32.mrf.mxu3 }
 0x192   : > { %v730_v38 = vmul.f32 0.17677669, %v707_v32 }
 0x193   : > { %v726_v34 = vpop.f32.mrf.mxu0 }
 0x194   : > { %v731_v35 = vmul.f32 0.17677669, %v726_v34  ;;  %v738_v43 = vadd.f32 %v734_v40, %v730_v38 }
 0x196   : > { %v739_v37 = vadd.f32 %v735_v33, %v731_v35  ;;  %v741_v44 = vsel %vm740_vm2, %v738_v43, -inf }
 0x198   : > { %v744_v39 = vsel %vm740_vm2, %v739_v37, -inf }
 0x199   : > { %745 = vmax.xlane.f32.xlu0 %v744_v39  ;;  %v709_v41 = vpop.f32.mrf.mxu3 }
 0x19b   : > { %v728_v42 = vpop.f32.mrf.mxu0 }
 0x1a1   : > { %742 = vmax.xlane.f32.xlu0 %v741_v44 }
 0x20c   : > { %v746_v46 = vpop.xlane.xlu0 %745 }
 0x20d   : > { %v748_v47 = vsub.f32 %v739_v37, %v746_v46 }
 0x20f   : > { %v751_v50 = vmul.f32 1.442695, %v748_v47  ;;  %v1494_v47 = vld [vmem:[%s2483_s28] sm:$0xff] }
 0x211   : > { %1628 = vpow2.f32 %v751_v50 }
 0x214   : > { %v743_v53 = vpop.xlane.xlu0 %742 }
 0x215   : > { %v747_v54 = vsub.f32 %v738_v43, %v743_v53  ;;  %v1495_v43 = vld [vmem:[%s2482_s20 + $0x8] sm:$0xff] }
 0x216   : > { %919 = vmatpush.bf16.msra.mxu0 %v1495_v43 }
 0x217   : > { %v1629_v57 = vpop.eup %1628  ;;  %v749_v58 = vmul.f32 1.442695, %v747_v54 }
 0x218   : > { %v756_v59 = vsel %vm740_vm2, %v1629_v57, 0.0 }
 0x219   : > { %1630 = vpow2.f32 %v749_v58  ;;  %757 = vadd.xlane.f32.xlu1 %v756_v59 }
 0x21a   : > { %920 = vmatpush.bf16.msra.mxu0 %v1494_v47 }
 0x21f   : > { %v1631_v62 = vpop.eup %1630 }
 0x220   : > { %v753_v63 = vsel %vm740_vm2, %v1631_v62, 0.0 }
 0x221   : > { %754 = vadd.xlane.f32.xlu1 %v753_v63 }
 0x28c   : > { %v758_v1 = vpop.xlane.xlu1 %757 }
 0x28d   : > { %1632 = vrcp.f32 %v758_v1 }
 0x293   : > { %v1633_v2 = vpop.eup %1632 }
 0x294   : > { %v762_v3 = vmul.f32 %v1633_v2, %v1629_v57  ;;  %v755_v4 = vpop.xlane.xlu1 %754 }
 0x295   : > { %1634 = vrcp.f32 %v755_v4  ;;  %v893_v4 = vperm.slane %v2314_v60, 1 }
 0x296   : > { %v764_v7 = vpack.c.bf16 %v762_v3, %v762_v3  ;;  %1636 = vrcp.f32 %v1949_v28 }
 0x298   : > { %1441 = vmatmul.msk.bf16.vlgmr.msrb.gmra.mxu2 %vm740_vm2, %v764_v7 }
 0x29b   : > { %v1635_v8 = vpop.eup %1634 }
 0x29c   : > { %v761_v10 = vmul.f32 %v1635_v8, %v1631_v62  ;;  %v1637_v29 = vpop.eup %1636 }
 0x29d   : > { %v846_v30 = vmul.f32 32.0, %v1637_v29  ;;  %vm850_vm4 = vweird.f32 %v1637_v29 }
 0x29e   : > { %v763_v11 = vpack.c.bf16 %v761_v10, %v761_v10 }
 0x29f   : > { %v847_v31 = vsub.f32 1.0, %v846_v30 }
 0x2a0   : > { %1440 = vmatmul.msk.bf16.vlgmr.msrb.gmra.mxu1 %vm740_vm2, %v763_v11 }
 0x2a1   : > { %v848_v32 = vmul.f32 %v1637_v29, %v847_v31 }
 0x2a3   : > { %v849_v33 = vadd.f32 %v1637_v29, %v848_v32 }
 0x31b   : > { %v802_v13 = vpop.f32.mrf.mxu2 }
 0x31d   : > { %v783_v14 = vpop.f32.mrf.mxu1 }
 0x31e   : > { %v806_v15 = vpack.c.bf16 %v802_v13, %v783_v14  ;;  %v1499_v14 = vld [vmem:[%s2240_s4 + $0x18] sm:$0xff] }
 0x31f   : > { %979 = vmatpush.bf16.msra.mxu1 %v1499_v14  ;;  %v1035_v14 = vperm.slane %v2314_v60, 2 }
 0x320   : > { %1450 = vmatmul.msk.bf16.vlgmr.msrb.gmra.mxu3 %vm616_vm1, %v806_v15  ;;  %v1498_v15 = vld [vmem:[%s2240_s4 + $0x10] sm:$0xff] }
 0x323   : > { %v804_v16 = vpop.f32.mrf.mxu2  ;;  %980 = vmatpush.bf16.msra.mxu1 %v1498_v15 }
 0x324   : > { %v1497_v16 = vld [vmem:[%s2240_s4 + $0x8] sm:$0xff] }
 0x325   : > { %v785_v17 = vpop.f32.mrf.mxu1 }
 0x326   : > { %v897_v17 = vperm.slane %v2268_v9, 4 }
 0x327   : > { %981 = vmatpush.bf16.msra.mxu1 %v1497_v16 }
 0x3a3   : > { %v832_v19 = vpop.f32.mrf.mxu3 }
 0x3a4   : > { %v833_v20 = vadd.f32 %v832_v19, %v807_v18  ;;  %v1496_v19 = vld [vmem:[%s2240_s4] sm:$0xff] }
 0x3a5   : > { %982 = vmatpush.bf16.msra.mxu1 %v1496_v19 }
 0x3a6   : > { %v837_v21 = vadd.f32 %v833_v20, %v2259_v5  ;;  %v2300_v5 = vsel %vm850_vm4, %v1637_v29, %v849_v33 }
 0x3a8   : > { %v839_v22 = vsel %vm616_vm1, %v837_v21, 0.0 }
 0x3a9   : > { %840 = vadd.xlane.f32.xlu2 %v839_v22 }
 0x3ab   : > { %v834_v23 = vpop.f32.mrf.mxu3 }
 0x3ac   : > { %v835_v24 = vadd.f32 %v834_v23, %v807_v18 }
 0x3ae   : > { %v838_v25 = vadd.f32 %v835_v24, %v2261_v6 }
 0x3b0   : > { %v842_v26 = vsel %vm616_vm1, %v838_v25, 0.0 }
 0x3b1   : > { %843 = vadd.xlane.f32.xlu2 %v842_v26 }
 0x41c   : > { %v841_v34 = vpop.xlane.xlu2 %840 }
 0x41d   : > { %v852_v35 = vmul.f32 %v2300_v5, %v841_v34 }
 0x41f   : > { %v854_v36 = vsub.f32 %v837_v21, %v852_v35 }
 0x421   : > { %v856_v6 = vmul.f32 %v854_v36, %v854_v36 }
 0x423   : > { %v858_v37 = vsel %vm616_vm1, %v856_v6, 0.0 }
 0x424   : > { %859 = vadd.xlane.f32.xlu0 %v858_v37  ;;  %v844_v38 = vpop.xlane.xlu2 %843 }
 0x425   : > { %v853_v39 = vmul.f32 %v2300_v5, %v844_v38 }
 0x427   : > { %v855_v40 = vsub.f32 %v838_v25, %v853_v39 }
 0x429   : > { %v857_v41 = vmul.f32 %v855_v40, %v855_v40 }
 0x42b   : > { %v861_v42 = vsel %vm616_vm1, %v857_v41, 0.0 }
 0x42c   : > { %862 = vadd.xlane.f32.xlu1 %v861_v42  ;;  %v946_v42 = vperm.slane %v2268_v9, 5 }
 0x497   : > { %v860_v44 = vpop.xlane.xlu0 %859 }
 0x498   : > { %v864_v45 = vmul.f32 %v860_v44, %v2300_v5 }
 0x49a   : > { %v866_v46 = vadd.f32 1e-05, %v864_v45 }
 0x49c   : > { %1638 = vrsqrt.f32 %v866_v46  ;;  %vm874_vm6 = vweird.f32 %v866_v46 }
 0x49f   : > { %v863_v48 = vpop.xlane.xlu1 %862 }
 0x4a0   : > { %v865_v49 = vmul.f32 %v863_v48, %v2300_v5 }
 0x4a2   : > { %v1639_v50 = vpop.eup %1638  ;;  %v867_v51 = vadd.f32 1e-05, %v865_v49 }
 0x4a3   : > { %v869_v52 = vmul.f32 %v1639_v50, %v866_v46  ;;  %vm875_vm5 = vweird.f32 %v1639_v50 }
 0x4a4   : > { %1640 = vrsqrt.f32 %v867_v51  ;;  %vm876_vm7 = vmor %vm874_vm6, %vm875_vm5  ;;  %vm884_vm9 = vweird.f32 %v867_v51 }
 0x4a5   : > { %v870_v53 = vmul.f32 %v1639_v50, %v869_v52 }
 0x4a7   : > { %v871_v54 = vmul.f32 0.5, %v870_v53 }
 0x4a9   : > { %v872_v55 = vsub.f32 1.5, %v871_v54 }
 0x4aa   : > { %v1641_v56 = vpop.eup %1640 }
 0x4ab   : > { %v873_v57 = vmul.f32 %v1639_v50, %v872_v55  ;;  %v879_v58 = vmul.f32 %v1641_v56, %v867_v51  ;;  %vm885_vm8 = vweird.f32 %v1641_v56 }
 0x4ac   : > { %vm886_vm10 = vmor %vm884_vm9, %vm885_vm8 }
 0x4ad   : > { %v880_v59 = vmul.f32 %v1641_v56, %v879_v58  ;;  %v877_v61 = vsel %vm876_vm7, %v1639_v50, %v873_v57 }
 0x4ae   : > { %v888_v1 = vmul.f32 %v877_v61, %v854_v36 }
 0x4af   : > { %v881_v62 = vmul.f32 0.5, %v880_v59 }
 0x4b0   : > { %v891_v7 = vmul.f32 %v890_v0, %v888_v1 }
 0x4b1   : > { %v882_v63 = vsub.f32 1.5, %v881_v62 }
 0x4b2   : > { %v894_v11 = vadd.f32 %v893_v4, %v891_v7 }
 0x4b3   : > { %v883_v2 = vmul.f32 %v1641_v56, %v882_v63 }
 0x4b5   : > { %v887_v3 = vsel %vm886_vm10, %v1641_v56, %v883_v2 }
 0x4b6   : > { %v889_v8 = vmul.f32 %v887_v3, %v855_v40 }
 0x4b8   : > { %v892_v10 = vmul.f32 %v890_v0, %v889_v8 }
 0x4ba   : > { %v895_v12 = vadd.f32 %v893_v4, %v892_v10 }
 0x4bc   : > { %v896_v13 = vpack.c.bf16 %v895_v12, %v894_v11 }
 0x4be   : > { %1459 = vmatmul.msk.bf16.vlgmr.msra.gmra.mxu0 %vm616_vm1, %v896_v13 }
 0x53b   : > { %v922_v18 = vpop.f32.mrf.mxu0 }
 0x53c   : > { %v923_v20 = vadd.f32 %v922_v18, %v897_v17 }
 0x53e   : > { %v927_v21 = vmul.f32 %v923_v20, %v923_v20 }
 0x540   : > { %v929_v22 = vmul.f32 %v927_v21, %v923_v20 }
 0x542   : > { %v931_v23 = vmul.f32 0.044715, %v929_v22 }
 0x543   : > { %v924_v24 = vpop.f32.mrf.mxu0 }
 0x544   : > { %v933_v25 = vadd.f32 %v931_v23, %v923_v20  ;;  %v925_v26 = vadd.f32 %v924_v24, %v897_v17  ;;  %v1038_v17 = vperm.slane %v2314_v60, 3 }
 0x546   : > { %v935_v28 = vmul.f32 0.7978846, %v933_v25  ;;  %v928_v29 = vmul.f32 %v925_v26, %v925_v26 }
 0x548   : > { %v930_v30 = vmul.f32 %v928_v29, %v925_v26  ;;  %1642 = vtanh.f32 %v935_v28 }
 0x54a   : > { %v932_v31 = vmul.f32 0.044715, %v930_v30 }
 0x54c   : > { %v934_v32 = vadd.f32 %v932_v31, %v925_v26 }
 0x54e   : > { %v936_v33 = vmul.f32 0.7978846, %v934_v32  ;;  %v1643_v34 = vpop.eup %1642 }
 0x54f   : > { %v939_v35 = vadd.f32 1.0, %v1643_v34 }
 0x550   : > { %1644 = vtanh.f32 %v936_v33 }
 0x551   : > { %v941_v6 = vmul.f32 0.5, %v939_v35 }
 0x553   : > { %v943_v39 = vmul.f32 %v941_v6, %v923_v20 }
 0x556   : > { %v1645_v36 = vpop.eup %1644 }
 0x557   : > { %v940_v37 = vadd.f32 1.0, %v1645_v36 }
 0x559   : > { %v942_v38 = vmul.f32 0.5, %v940_v37 }
 0x55b   : > { %v944_v40 = vmul.f32 %v942_v38, %v925_v26 }
 0x55d   : > { %v945_v41 = vpack.c.bf16 %v944_v40, %v943_v39 }
 0x55f   : > { %1476 = vmatmul.msk.bf16.vlgmr.msra.gmra.mxu1 %vm971_vm11, %v945_v41 }
 0x5dc   : > { %v984_v43 = vpop.f32.mrf.mxu1 }
 0x5dd   : > { %v985_v44 = vadd.f32 %v984_v43, %v946_v42 }
 0x5df   : > { %v989_v45 = vadd.f32 %v985_v44, %v894_v11 }
 0x5e1   : > { %v991_v46 = vsel %vm616_vm1, %v989_v45, 0.0 }
 0x5e2   : > { %992 = vadd.xlane.f32.xlu2 %v991_v46 }
 0x5e4   : > { %v986_v47 = vpop.f32.mrf.mxu1 }
 0x5e5   : > { %v987_v48 = vadd.f32 %v986_v47, %v946_v42 }
 0x5e7   : > { %v990_v49 = vadd.f32 %v987_v48, %v895_v12 }
 0x5e9   : > { %v994_v50 = vsel %vm616_vm1, %v990_v49, 0.0 }
 0x5ea   : > { %995 = vadd.xlane.f32.xlu0 %v994_v50 }
 0x655   : > { %v993_v51 = vpop.xlane.xlu2 %992 }
 0x656   : > { %v997_v52 = vmul.f32 %v993_v51, %v2300_v5 }
 0x658   : > { %v999_v53 = vsub.f32 %v989_v45, %v997_v52 }
 0x65a   : > { %v1001_v54 = vmul.f32 %v999_v53, %v999_v53 }
 0x65c   : > { %v1003_v55 = vsel %vm616_vm1, %v1001_v54, 0.0 }
 0x65d   : > { %v996_v9 = vpop.xlane.xlu0 %995  ;;  %1004 = vadd.xlane.f32.xlu1 %v1003_v55 }
 0x65e   : > { %v998_v56 = vmul.f32 %v996_v9, %v2300_v5 }
 0x660   : > { %v1000_v57 = vsub.f32 %v990_v49, %v998_v56 }
 0x662   : > { %v1002_v58 = vmul.f32 %v1000_v57, %v1000_v57 }
 0x664   : > { %v1006_v59 = vsel %vm616_vm1, %v1002_v58, 0.0 }
 0x665   : > { %1007 = vadd.xlane.f32.xlu2 %v1006_v59 }
 0x6d0   : > { %v1005_v61 = vpop.xlane.xlu1 %1004 }
 0x6d1   : > { %v1009_v62 = vmul.f32 %v1005_v61, %v2300_v5 }
 0x6d3   : > { %v1011_v63 = vadd.f32 1e-05, %v1009_v62 }
 0x6d5   : > { %1646 = vrsqrt.f32 %v1011_v63  ;;  %vm1019_vm13 = vweird.f32 %v1011_v63 }
 0x6d8   : > { %v1008_v0 = vpop.xlane.xlu2 %1007 }
 0x6d9   : > { %v1010_v1 = vmul.f32 %v1008_v0, %v2300_v5 }
 0x6db   : > { %v1647_v2 = vpop.eup %1646  ;;  %v1012_v3 = vadd.f32 1e-05, %v1010_v1 }
 0x6dc   : > { %v1014_v4 = vmul.f32 %v1647_v2, %v1011_v63  ;;  %vm1020_vm12 = vweird.f32 %v1647_v2 }
 0x6dd   : > { %1648 = vrsqrt.f32 %v1012_v3  ;;  %vm1021_vm14 = vmor %vm1019_vm13, %vm1020_vm12  ;;  %vm1029_vm0 = vweird.f32 %v1012_v3 }
 0x6de   : > { %v1015_v7 = vmul.f32 %v1647_v2, %v1014_v4 }
 0x6e0   : > { %v1016_v8 = vmul.f32 0.5, %v1015_v7 }
 0x6e2   : > { %v1017_v10 = vsub.f32 1.5, %v1016_v8 }
 0x6e3   : > { %v1649_v11 = vpop.eup %1648 }
 0x6e4   : > { %v1018_v12 = vmul.f32 %v1647_v2, %v1017_v10  ;;  %v1024_v13 = vmul.f32 %v1649_v11, %v1012_v3  ;;  %vm1030_vm15 = vweird.f32 %v1649_v11 }
 0x6e5   : > { %vm1031_vm2 = vmor %vm1029_vm0, %vm1030_vm15 }
 0x6e6   : > { %v1022_v15 = vsel %vm1021_vm14, %v1647_v2, %v1018_v12  ;;  %v1025_v16 = vmul.f32 %v1649_v11, %v1024_v13 }
 0x6e7   : > { %v1033_v5 = vmul.f32 %v1022_v15, %v999_v53 }
 0x6e8   : > { %v1026_v18 = vmul.f32 0.5, %v1025_v16 }
 0x6e9   : > { %v1036_v19 = vmul.f32 %v1035_v14, %v1033_v5 }
 0x6ea   : > { %v1027_v20 = vsub.f32 1.5, %v1026_v18 }
 0x6eb   : > { %v1039_v21 = vadd.f32 %v1038_v17, %v1036_v19 }
 0x6ec   : > { %v1028_v22 = vmul.f32 %v1649_v11, %v1027_v20 }
 0x6ed   : > { %1041 = vst.msk [vmem:[#allocation2] sm:$0xff] %vm616_vm1, %v1039_v21 }
 0x6ee   : > { %v1032_v23 = vsel %vm1031_vm2, %v1649_v11, %v1028_v22 }
 0x6ef   : > { %v1034_v24 = vmul.f32 %v1032_v23, %v1000_v57 }
 0x6f1   : > { %v1037_v25 = vmul.f32 %v1035_v14, %v1034_v24  ;;  %1046 = sbr.rel (%p1477_p1) target bundleno = 2103 (0x837), region = 80 }
 0x6f3   : > { %v1040_v26 = vadd.f32 %v1038_v17, %v1037_v25 }
 0x6f5   : > { %1042 = vst.msk [vmem:[#allocation2 + $0x8] sm:$0xff] %vm616_vm1, %v1040_v26 }
 0x6f6   : > { %v1048_v60 = vlaneseq  ;;  %vm1077_vm3 = vcmask 58368   ;;  %v1054_v30 = vperm.slane %v2278_v27, 1  ;;  %v1047_v31 = vperm.slane %v2278_v27, 0 }
 0x6f7   : > { %v1078_v28 = vsel %vm1077_vm3, %v2278_v27, 0.0  ;;  %vm1094_vm4 = vcmask 1041409   ;;  %vm1097_vm5 = vcmask 254976  }
 0x6f8   : > { %v1049_v29 = vshrl.u32 %v1048_v60, 7  ;;  %1079 = vadd.xlane.f32.xlu1 %v1078_v28 }
 0x6fa   : > { %1650 = vset.pattern.permute.xlu0 %v1049_v29 }
 0x702   : > { %1059 = vperm.xlu0 %1650, %v1054_v30  }
 0x70a   : > { %1052 = vperm.xlu0 %1650, %v1047_v31  }
 0x76b   : > { %v1080_v32 = vpop.xlane.xlu1 %1079 }
 0x76c   : > { %v1081_v35 = vmax.f32 %v1080_v32, 1e-09 }
 0x76e   : > { %1651 = vrcp.f32 %v1081_v35 }
 0x774   : > { %v1060_v33 = vpop.permute.xlu0 %1059  ;;  %v1652_v42 = vpop.eup %1651 }
 0x775   : > { %v1062_v34 = vmul.f32 %v1060_v33, %v1040_v26  ;;  %v1084_v46 = vrot.slane %v1652_v42, 1 }
 0x777   : > { %v1070_v36 = vsel %vm616_vm1, %v1062_v34, 0.0 }
 0x778   : > { %v1071_v6 = vrot.slane %v1070_v36, 4 }
 0x77a   : > { %v1072_v37 = vadd.f32 %v1071_v6, %v1070_v36 }
 0x77c   : > { %v1073_v38 = vrot.slane %v1072_v37, 2  ;;  %v1053_v39 = vpop.permute.xlu0 %1052 }
 0x77d   : > { %v1061_v40 = vmul.f32 %v1053_v39, %v1039_v21 }
 0x77e   : > { %v1074_v41 = vadd.f32 %v1073_v38, %v1072_v37 }
 0x77f   : > { %v1063_v43 = vsel %vm616_vm1, %v1061_v40, 0.0 }
 0x780   : > { %v1075_v44 = vrot.slane %v1074_v41, 1  ;;  %v1064_v45 = vrot.slane %v1063_v43, 4 }
 0x782   : > { %v1076_v27 = vadd.f32 %v1075_v44, %v1074_v41  ;;  %v1065_v47 = vadd.f32 %v1064_v45, %v1063_v43 }
 0x784   : > { %v1066_v48 = vrot.slane %v1065_v47, 2  ;;  %v1088_v50 = vmul.f32 %v1084_v46, %v1076_v27 }
 0x786   : > { %v1067_v49 = vadd.f32 %v1066_v48, %v1065_v47  ;;  %v1090_v53 = vmul.f32 %v1088_v50, %v1088_v50 }
 0x788   : > { %v1068_v51 = vrot.slane %v1067_v49, 1  ;;  %v1093_v9 = vrot.slane %v1090_v53, 7 }
 0x78a   : > { %v1069_v52 = vadd.f32 %v1068_v51, %v1067_v49 }
 0x78c   : > { %v1087_v54 = vmul.f32 %v1652_v42, %v1069_v52 }
 0x78e   : > { %v1089_v55 = vmul.f32 %v1087_v54, %v1087_v54 }
 0x790   : > { %v1095_v56 = vsel %vm1094_vm4, %v1093_v9, %v1089_v55 }
 0x791   : > { %v1098_v57 = vsel %vm1097_vm5, %v1095_v56, 0.0 }
 0x792   : > { %1099 = vadd.xlane.f32.xlu1 %v1098_v57 }
 0x805   : > { %v1100_v58 = vpop.xlane.xlu1 %1099 }
 0x806   : > { %1653 = vrsqrt.f32 %v1100_v58  ;;  %vm1108_vm6 = vcmp.eq.f32.partialorder %v1100_v58, inf  ;;  %v1111_v3 = vand.u32 2147483648, %v1100_v58  ;;  %vm1110_vm7 = vcmp.eq.f32.partialorder %v1100_v58, 0.0 }
 0x80c   : > { %v1654_v59 = vpop.eup %1653 }
 0x80d   : > { %v1102_v61 = vmul.f32 %v1654_v59, %v1100_v58 }
 0x80f   : > { %v1103_v62 = vmul.f32 %v1654_v59, %v1102_v61 }
 0x811   : > { %v1104_v63 = vmul.f32 0.5, %v1103_v62 }
 0x813   : > { %v1105_v0 = vsub.f32 1.5, %v1104_v63 }
 0x815   : > { %v1106_v1 = vmul.f32 %v1654_v59, %v1105_v0 }
 0x817   : > { %v1107_v2 = vmul.f32 %v1106_v1, %v1100_v58 }
 0x819   : > { %v1109_v4 = vsel %vm1108_vm6, %v1100_v58, %v1107_v2 }
 0x81a   : > { %v1112_v7 = vsel %vm1110_vm7, %v1111_v3, %v1109_v4 }
 0x81b   : > { %v1113_v8 = vmax.f32 %v1112_v7, 1e-12 }
 0x81d   : > { %v1115_v10 = vrot.slane %v1113_v8, 1  ;;  %1655 = vrcp.f32 %v1113_v8  ;;  %vm1123_vm9 = vweird.f32 %v1113_v8  ;;  %v1127_v5 = vand.u32 2147483647, %v1113_v8 }
 0x81e   : > { %v1129_v18 = vand.u32 2147483648, %v1113_v8 }
 0x81f   : > { %1657 = vrcp.f32 %v1115_v10  ;;  %v1144_v19 = vand.u32 2147483648, %v1115_v10  ;;  %v1142_v22 = vand.u32 2147483647, %v1115_v10  ;;  %vm1138_vm12 = vweird.f32 %v1115_v10 }
 0x820   : > { %v1130_v25 = vor.u32 1.1754944e-38, %v1129_v18  ;;  %vm1128_vm14 = vcmp.eq.f32.partialorder %v1127_v5, 8.507059e+37 }
 0x821   : > { %v1145_v26 = vor.u32 1.1754944e-38, %v1144_v19  ;;  %vm1143_vm15 = vcmp.eq.f32.partialorder %v1142_v22, 8.507059e+37 }
 0x823   : > { %v1656_v11 = vpop.eup %1655 }
 0x824   : > { %v1119_v12 = vmul.f32 %v1656_v11, %v1113_v8  ;;  %vm1124_vm8 = vweird.f32 %v1656_v11 }
 0x825   : > { %v1658_v13 = vpop.eup %1657  ;;  %vm1125_vm11 = vmor %vm1123_vm9, %vm1124_vm8 }
 0x826   : > { %v1120_v14 = vsub.f32 1.0, %v1119_v12  ;;  %v1134_v15 = vmul.f32 %v1658_v13, %v1115_v10  ;;  %vm1139_vm10 = vweird.f32 %v1658_v13 }
 0x827   : > { %vm1140_vm13 = vmor %vm1138_vm12, %vm1139_vm10 }
 0x828   : > { %v1121_v16 = vmul.f32 %v1656_v11, %v1120_v14  ;;  %v1135_v17 = vsub.f32 1.0, %v1134_v15 }
 0x82a   : > { %v1122_v20 = vadd.f32 %v1656_v11, %v1121_v16  ;;  %v1136_v21 = vmul.f32 %v1658_v13, %v1135_v17 }
 0x82c   : > { %v1126_v23 = vsel %vm1125_vm11, %v1656_v11, %v1122_v20  ;;  %v1137_v24 = vadd.f32 %v1658_v13, %v1136_v21 }
 0x82d   : > { %v1131_v28 = vsel %vm1128_vm14, %v1130_v25, %v1126_v23 }
 0x82e   : > { %v1141_v60 = vsel %vm1140_vm13, %v1658_v13, %v1137_v24  ;;  %v1132_v31 = vmul.f32 %v1131_v28, %v1087_v54 }
 0x82f   : > { %v1146_v29 = vsel %vm1143_vm15, %v1145_v26, %v1141_v60 }
 0x830   : > { %v1147_v30 = vmul.f32 %v1146_v29, %v1088_v50 }
 0x832   : > { %v1150_v32 = vrot.slane %v1147_v30, 7 }
 0x834   : > { %v1151_v33 = vsel %vm1094_vm4, %v1150_v32, %v1132_v31 }
 0x835   : > { %v1153_v34 = vsel %vm616_vm1, %v1151_v33, 0.0 }
 0x836   : > { %1154 = vst [vmem:[%s2251_s24] sm:$0x3] %v1153_v34 }
 0x837 PF: > { %s2485_s25 = sld [smem:[#allocation22_spill]]  ;;  %s1168_s5 = sshll.u32 %s2251_s24, 4  ;;  %s1169_s5 = int_to_ptr.vmem [resolvable:$true] %s1168_s5 }
 0x838   : > { %s2487_s17 = sld [smem:[#allocation40_spill]]  ;;  %s1156_s2 = scalar_lea.sflag [#allocation5], %s2202_s10 }
 0x83d   : > { %s1479_s18 = sshll.u32 %s2485_s25, 1 }
 0x83e   : > { %s1166_s26 = scalar_lea.hbm %s2487_s17, %s1479_s18  ;;  %s1829_s8 = scalar_lea.hbm %s2487_s17, 4 }
 0x83f   : > { %s1170_s4 = sshll.u32 %s1166_s26, 4  ;;  %s1171_s4 = int_to_ptr.hbm [resolvable:$true] %s1170_s4 }
 0x840   : > { %s1823_s15 = sshra.s32 %s1171_s4, 4  ;;  %s1824_s15 = int_to_ptr.hbm [resolvable:$true] %s1823_s15 }
 0x841   : > { %s1825_s11 = scalar_lea.hbm %s1824_s15, 2  ;;  %p1830_p4 = scmp.lt.s32.totalorder %s1824_s15, %s2487_s17 }
 0x842   : > { %p1826_p0 = scmp.ne.s32.totalorder %s1824_s15, %s1825_s11  ;;  %p1831_p6 = scmp.lt.s32.totalorder %s1829_s8, %s1825_s11 }
 0x844   : > { %p1827_p2 = pnand %p1826_p0, %p2087_p12  ;;  %p1832_p7 = por %p1831_p6, %p1830_p4 }
 0x846   : > { %p1828_p3 = pneg %p1827_p2 }
 0x848   : > { %p1833_p8 = pnand %p1832_p7, %p1828_p3 }
 0x84a   : > { %1836 = shalt.err (!%p1833_p8)
}
 0x84b   : > { %1511 = dma.vmem_to_hbm [thread:$0]  (%p2087_p12), %s1169_s5, 32, %s1171_s4, %s1156_s2  }
 0x84c PF: > { %s2488_s10 = sld [smem:[#allocation23_spill]] }
 0x84d   : > { %s2489_s24 = sld [smem:[#allocation19_spill]] }
 0x852   : > { %p1534_p9 = scmp.ge.s32.totalorder %s2488_s10, 2 }
 0x853   : > { %s1182_s16 = sand.u32 1, %s2489_s24  }
 0x854   : > { %p1530_p10 = pnand %p1534_p9, %p2091_p13  ;;  %s1183_s22 = scalar_lea.sflag [#allocation5], %s1182_s16 }
 0x856   : > { %p1531_p5 = pneg %p1530_p10 }
 0x858   : > { %1898 = dma.done.wait (%p1531_p5), %s1183_s22, 32  }
 0x859   : > { %1900 = vsyncadd (%p1531_p5), %s1183_s22, 4294967264  ;;  %s30_s15 = sadd.s32 1, %s2488_s10   ;;  %s2491_s27 = sld [smem:[#allocation18_spill]] }
 0x85a   : > { %p27_p11 = scmp.ge.s32.totalorder %s30_s15, 6   ;;  %s2492_s20 = sld [smem:[#allocation32_spill]] }
 0x85b   : > { %s2493_s19 = sld [smem:[#allocation20_spill]]  ;;  %s2497_s28 = smov %s1911_s29 }
 0x85c   : > { %s2494_s10 = sld [smem:[#allocation33_spill]]  ;;  %s2499_s30 = smov %s1919_s9 }
 0x85d   : > { %s2495_s25 = sld [smem:[#allocation30_spill]]  ;;  %s2501_s11 = smov %s1935_s13 }
 0x85e   : > { %s2496_s18 = sld [smem:[#allocation31_spill]]  ;;  %s2502_s12 = smov %s1939_s14 }
 0x860   : > { %s2498_s29 = smov %s2492_s20  ;;  %29 = sbr.rel (!%p27_p11) target bundleno = 21 (0x15), region = 164 }
 0x861   : > { %s2500_s9 = smov %s2493_s19 }
 0x863   : > { %s2503_s13 = smov %s2495_s25 }
 0x864   : > { %s2504_s14 = smov %s2496_s18 }
 0x865   :  { %1189 = vsyncpa [#allocation4], 1 }
 0x866   :  { %1191 = vsyncpa [#allocation4 + $0x1], 1 }
 0x867   :  { %1192 = vsyncpa [#allocation7], 1 }
 0x868   :  { %1194 = vsyncpa [#allocation7 + $0x1], 1 }
 0x869   :  { %1195 = vsyncpa [#allocation10], 1 }
 0x86a   :  { %1197 = vsyncpa [#allocation10 + $0x1], 1 }
 0x86b   :  { %1198 = vsyncpa [#allocation5], 1 }
 0x86c   :  { %1200 = vsyncpa [#allocation5 + $0x1], 1 }

</bundles_post_ra>
